<compile_context>
chip_gen: v6e
topology: v6e:2x2x1
jax: 0.10.0
libtpu: 0.0.40
codegen_flags: <defaults>
</compile_context>

<pallas_src>
import math

import jax
import jax.numpy as jnp
from jax.experimental import pallas as pl
from jax.experimental.pallas import tpu as pltpu

HIDDEN = 32          # hidden width of the synthetic neural SDF (sdf_scene)
TILE_N_MAX = 8192    # points per grid step (big tiles amortize grid overhead)


def _round_up(x, m):
    return ((x + m - 1) // m) * m


# -----------------------------------------------------------------------------
# Kernel
# -----------------------------------------------------------------------------
def sdf_normals_kernel(p_ref, w1_ref, b1_ref, w2_ref, b2_ref, w3_ref, out_ref):
    # ---- layer 1 on the VPU: z[f, t] = b1[f] + sum_k w1[f, k] * p[k, t] ----
    # (128,1) lane-broadcast weight columns x (1,T) sublane-broadcast coord
    # rows; three mul+add passes.  No MXU push for this K=3 contraction.
    z = b1_ref[...] + w1_ref[:, 0:1] * p_ref[0:1, :]
    z = z + w1_ref[:, 1:2] * p_ref[1:2, :]
    z = z + w1_ref[:, 2:3] * p_ref[2:3, :]
    h = jnp.maximum(z, 0.0)                                              # (4H, T)

    hp = jax.lax.Precision.HIGHEST

    # ---- layer 2: block-diagonal (4H, 4H) weight -> one 128-wide MXU pass,
    # bias + ReLU fused into the pop->store pass. ----
    h = jnp.maximum(
        jnp.dot(w2_ref[...], h, precision=hp,
                preferred_element_type=jnp.float32) + b2_ref[...],
        0.0)                                                             # (4H, T)

    # ---- layer 3 with (v_k - v_0) differencing and offsets_inverse folded
    # into the weights: this matmul directly produces the un-normalized
    # gradient. ----
    g = jnp.dot(w3_ref[...], h, precision=hp,
                preferred_element_type=jnp.float32)                     # (3, T)

    # F.normalize(grad, dim=-1, p=2, eps=0.0): eps = 0 is reproduced exactly
    # (a zero gradient yields NaN, same as the PyTorch reference).
    sq = jnp.sum(g * g, axis=0, keepdims=True)                          # (1, T)
    out_ref[...] = g * jax.lax.rsqrt(sq)


# -----------------------------------------------------------------------------
# Weight packing (host/XLA glue, done once outside the kernel)
# -----------------------------------------------------------------------------
def _pack_weights(offsets, offsets_inverse, params):
    w1, b1, w2, b2, w3, b3 = params
    h = w1.shape[1]
    offs = jnp.asarray(offsets, jnp.float32)
    oinv = jnp.asarray(offsets_inverse, jnp.float32)
    w1 = jnp.asarray(w1, jnp.float32)
    b1 = jnp.asarray(b1, jnp.float32).reshape(1, h)
    w2 = jnp.asarray(w2, jnp.float32)
    b2 = jnp.asarray(b2, jnp.float32).reshape(1, h)
    w3 = jnp.asarray(w3, jnp.float32).reshape(h, 1)
    # b3 cancels exactly in v_k - v_0 (sum of the fused coefficients is 0).

    # Layer 1: tiled weights + offsets folded into a per-block bias.
    w1p_t = jnp.tile(w1.T, (4, 1))                                     # (4H, 3)
    b1_col = (offs @ w1 + b1).reshape(4 * h, 1)                        # (4H, 1)

    # Layer 2: block-diagonal so all 4 branches run in a single matmul.
    w2bd_t = jnp.kron(jnp.eye(4, dtype=jnp.float32), w2.T)             # (4H, 4H)
    b2_col = jnp.tile(b2.reshape(h, 1), (4, 1))                        # (4H, 1)

    # Layer 3 fused with differencing + offsets_inverse:
    #   grad_i = sum_k coeff[k, i] * (h2_k @ w3)
    #   coeff[0, i] = -sum_j oinv[i, j],  coeff[k, i] = oinv[i, k-1]  (k = 1..3)
    coeff = jnp.concatenate([-oinv.sum(axis=1)[None, :], oinv.T], axis=0)   # (4, 3)
    w3g_t = (w3.reshape(1, h, 1) * coeff.reshape(4, 1, 3)).reshape(4 * h, 3).T  # (3, 4H)

    return w1p_t, b1_col, w2bd_t, b2_col, w3g_t


# -----------------------------------------------------------------------------
# Wrapper
# -----------------------------------------------------------------------------
def sdf_normals(surface_coords, offsets, offsets_inverse, params):
    lead = surface_coords.shape[:-1]
    pts = surface_coords.reshape(-1, 3).astype(jnp.float32)
    n = pts.shape[0]

    # Tile selection:
    #  * cdiv-based split bounds padding waste to <128 points per tile,
    #  * at least 2 grid steps whenever there is >1 tile worth of points so the
    #    "parallel" point axis can shard across TensorCores on v7x,
    #  * tiles up to TILE_N_MAX amortize the ~0.35us per-grid-step overhead.
    if n > 128:
        num_tiles = max(2, pl.cdiv(n, TILE_N_MAX))
    else:
        num_tiles = 1
    tile = _round_up(pl.cdiv(max(n, 1), num_tiles), 128)
    n_pad = tile * num_tiles
    if n_pad != n:
        pts = jnp.pad(pts, ((0, n_pad - n), (0, 0)))
    # TODO(synk): this transpose (and the one on return) is layout glue forced
    # by the point-major (..., 3) module contract; a feature-major API avoids it.
    p_t = pts.T                                        # (3, n_pad), lane-dense

    w1p_t, b1_col, w2bd_t, b2_col, w3g_t = _pack_weights(
        offsets, offsets_inverse, params)

    def full_spec(arr):
        # Constant block index -> Pallas keeps the (tiny) weight block resident
        # instead of re-fetching it every grid step.
        return pl.BlockSpec(arr.shape, lambda i: (0, 0))

    out_t = pl.pallas_call(
        sdf_normals_kernel,
        out_shape=jax.ShapeDtypeStruct((3, n_pad), jnp.float32),
        grid_spec=pltpu.PrefetchScalarGridSpec(
            num_scalar_prefetch=0,
            grid=(num_tiles,),
            in_specs=[
                pl.BlockSpec((3, tile), lambda i: (0, i)),   # coords tile
                full_spec(w1p_t), full_spec(b1_col),
                full_spec(w2bd_t), full_spec(b2_col),
                full_spec(w3g_t),
            ],
            out_specs=pl.BlockSpec((3, tile), lambda i: (0, i)),
        ),
        compiler_params=pltpu.CompilerParams(
            dimension_semantics=("parallel",),
            # (128, TILE_N) f32 intermediates at TILE_N=8192 are ~4 MiB each;
            # raise the scoped VMEM cap (v5e default is only 16 MiB).
            vmem_limit_bytes=48 * 1024 * 1024,
        ),
    )(p_t, w1p_t, b1_col, w2bd_t, b2_col, w3g_t)

    return out_t.T[:n].reshape(*lead, 3)


# -----------------------------------------------------------------------------
# Pure-JAX reference (mirrors the PyTorch forward exactly)
# -----------------------------------------------------------------------------
def reference_forward(surface_coords, offsets, offsets_inverse, params):
    w1, b1, w2, b2, w3, b3 = params
    hp = jax.lax.Precision.HIGHEST

    def mlp(x):
        h = jnp.maximum(jnp.matmul(x, w1, precision=hp) + b1, 0.0)
        h = jnp.maximum(jnp.matmul(h, w2, precision=hp) + b2, 0.0)
        return jnp.matmul(h, w3, precision=hp) + b3

    offset_values = mlp(surface_coords[..., None, :] + offsets)          # (..., 4, 1)
    d_values = offset_values[..., 1:4, :] - offset_values[..., 0:1, :]   # (..., 3, 1)
    grad = (offsets_inverse * d_values[..., None, :, 0]).sum(-1)         # (..., 3)
    return grad / jnp.sqrt((grad * grad).sum(-1, keepdims=True))


# -----------------------------------------------------------------------------
if __name__ == "__main__":
    key = jax.random.PRNGKey(0)
    kx, k1, k2, k3, kb1, kb2 = jax.random.split(key, 6)

    # Buffers from SDFNormals.__init__
    s = 0.5 ** 0.5
    offsets = jnp.array([[1.0, 0.0, -s],
                         [-1.0, 0.0, -s],
                         [0.0, 1.0, s],
                         [0.0, -1.0, s]], dtype=jnp.float32) * 1e-4
    relative_offsets = offsets[1:4, :] - offsets[0:1, :]
    offsets_inverse = jnp.linalg.inv(relative_offsets)   # 3x3 constant (JAX glue)

    # Deterministic synthetic neural SDF (stands in for sdf_scene): 3 -> 32 -> 32 -> 1.
    w1 = jax.random.normal(k1, (3, HIDDEN), jnp.float32) / math.sqrt(3.0)
    b1 = jax.random.normal(kb1, (1, HIDDEN), jnp.float32) * 0.1
    w2 = jax.random.normal(k2, (HIDDEN, HIDDEN), jnp.float32) / math.sqrt(HIDDEN)
    b2 = jax.random.normal(kb2, (1, HIDDEN), jnp.float32) * 0.1
    w3 = jax.random.normal(k3, (HIDDEN, 1), jnp.float32) / math.sqrt(HIDDEN)
    b3 = jnp.zeros((1, 1), jnp.float32)
    params = (w1, b1, w2, b2, w3, b3)

    # Small surface-coordinate batch: (batch=2, points=128, 3).
    surface_coords = jax.random.normal(kx, (2, 128, 3), jnp.float32)

    normals = sdf_normals(surface_coords, offsets, offsets_inverse, params)
    normals = jax.block_until_ready(normals)

    ref = reference_forward(surface_coords, offsets, offsets_inverse, params)

    assert normals.shape == surface_coords.shape
    assert bool(jnp.all(jnp.isfinite(normals)))
    # Finite differencing with 1e-4 offsets amplifies f32 matmul rounding, so
    # compare directions (cosine similarity) rather than exact components.
    cos = jnp.sum(normals * ref, axis=-1)
    assert bool(jnp.min(cos) > 0.97), f"min cosine similarity = {float(jnp.min(cos))}"

    print("KERNEL_OK")
</pallas_src>

<mosaic_0001>
module attributes {stable_mosaic.version = 11 : i64} {
  func.func @sdf_normals_kernel(%arg0: i32, %arg1: memref<3x128xf32, #tpu.memory_space<vmem>>, %arg2: memref<128x3xf32, #tpu.memory_space<vmem>>, %arg3: memref<128x1xf32, #tpu.memory_space<vmem>>, %arg4: memref<128x128xf32, #tpu.memory_space<vmem>>, %arg5: memref<128x1xf32, #tpu.memory_space<vmem>>, %arg6: memref<3x128xf32, #tpu.memory_space<vmem>>, %arg7: memref<3x128xf32, #tpu.memory_space<vmem>>) attributes {dimension_semantics = [#tpu.dimension_semantics<parallel>], iteration_bounds = array<i64: 2>, scalar_prefetch = 0 : i64, scratch_operands = 0 : i64, tpu.core_type = #tpu.core_type<tc>, window_params = [{transform_indices = @transform_0, window_bounds = array<i64: 3, 128>}, {pipeline_mode = #tpu.pipeline_mode<synchronous>, transform_indices = @transform_1, window_bounds = array<i64: 128, 3>}, {pipeline_mode = #tpu.pipeline_mode<synchronous>, transform_indices = @transform_2, window_bounds = array<i64: 128, 1>}, {pipeline_mode = #tpu.pipeline_mode<synchronous>, transform_indices = @transform_3, window_bounds = array<i64: 128, 128>}, {pipeline_mode = #tpu.pipeline_mode<synchronous>, transform_indices = @transform_4, window_bounds = array<i64: 128, 1>}, {pipeline_mode = #tpu.pipeline_mode<synchronous>, transform_indices = @transform_5, window_bounds = array<i64: 3, 128>}, {transform_indices = @transform_6, window_bounds = array<i64: 3, 128>}]} {
    %c0 = arith.constant 0 : index
    %c0_0 = arith.constant 0 : index
    %0 = vector.load %arg3[%c0, %c0_0] : memref<128x1xf32, #tpu.memory_space<vmem>>, vector<128x1xf32>
    %c0_1 = arith.constant 0 : index
    %c0_2 = arith.constant 0 : index
    %1 = vector.load %arg2[%c0_1, %c0_2] : memref<128x3xf32, #tpu.memory_space<vmem>>, vector<128x1xf32>
    %c0_3 = arith.constant 0 : index
    %c0_4 = arith.constant 0 : index
    %2 = vector.load %arg1[%c0_3, %c0_4] : memref<3x128xf32, #tpu.memory_space<vmem>>, vector<1x128xf32>
    %3 = vector.broadcast %1 : vector<128x1xf32> to vector<128x128xf32>
    %4 = vector.broadcast %2 : vector<1x128xf32> to vector<128x128xf32>
    %5 = arith.mulf %3, %4 : vector<128x128xf32>
    %6 = vector.broadcast %0 : vector<128x1xf32> to vector<128x128xf32>
    %7 = arith.addf %6, %5 : vector<128x128xf32>
    %c0_5 = arith.constant 0 : index
    %c1 = arith.constant 1 : index
    %8 = vector.load %arg2[%c0_5, %c1] : memref<128x3xf32, #tpu.memory_space<vmem>>, vector<128x1xf32>
    %c1_6 = arith.constant 1 : index
    %c0_7 = arith.constant 0 : index
    %9 = vector.load %arg1[%c1_6, %c0_7] : memref<3x128xf32, #tpu.memory_space<vmem>>, vector<1x128xf32>
    %10 = vector.broadcast %8 : vector<128x1xf32> to vector<128x128xf32>
    %11 = vector.broadcast %9 : vector<1x128xf32> to vector<128x128xf32>
    %12 = arith.mulf %10, %11 : vector<128x128xf32>
    %13 = arith.addf %7, %12 : vector<128x128xf32>
    %c0_8 = arith.constant 0 : index
    %c2 = arith.constant 2 : index
    %14 = vector.load %arg2[%c0_8, %c2] : memref<128x3xf32, #tpu.memory_space<vmem>>, vector<128x1xf32>
    %c2_9 = arith.constant 2 : index
    %c0_10 = arith.constant 0 : index
    %15 = vector.load %arg1[%c2_9, %c0_10] : memref<3x128xf32, #tpu.memory_space<vmem>>, vector<1x128xf32>
    %16 = vector.broadcast %14 : vector<128x1xf32> to vector<128x128xf32>
    %17 = vector.broadcast %15 : vector<1x128xf32> to vector<128x128xf32>
    %18 = arith.mulf %16, %17 : vector<128x128xf32>
    %19 = arith.addf %13, %18 : vector<128x128xf32>
    %cst = arith.constant 0.000000e+00 : f32
    %20 = vector.broadcast %cst : f32 to vector<128x128xf32>
    %21 = arith.maximumf %19, %20 : vector<128x128xf32>
    %c0_11 = arith.constant 0 : index
    %c0_12 = arith.constant 0 : index
    %22 = vector.load %arg4[%c0_11, %c0_12] : memref<128x128xf32, #tpu.memory_space<vmem>>, vector<128x128xf32>
    %cst_13 = arith.constant dense<0.000000e+00> : vector<128x128xf32>
    %23 = tpu.matmul %22, %21, %cst_13 {dimension_numbers = #tpu.dot_dimension_numbers<[1], [0], [0], [1], [0, 0, 1, 1], [], []>, precision = #tpu.contract_precision<fp32>} : vector<128x128xf32>, vector<128x128xf32>, vector<128x128xf32> -> vector<128x128xf32>
    %c0_14 = arith.constant 0 : index
    %c0_15 = arith.constant 0 : index
    %24 = vector.load %arg5[%c0_14, %c0_15] : memref<128x1xf32, #tpu.memory_space<vmem>>, vector<128x1xf32>
    %25 = vector.broadcast %24 : vector<128x1xf32> to vector<128x128xf32>
    %26 = arith.addf %23, %25 : vector<128x128xf32>
    %cst_16 = arith.constant 0.000000e+00 : f32
    %27 = vector.broadcast %cst_16 : f32 to vector<128x128xf32>
    %28 = arith.maximumf %26, %27 : vector<128x128xf32>
    %c0_17 = arith.constant 0 : index
    %c0_18 = arith.constant 0 : index
    %29 = vector.load %arg6[%c0_17, %c0_18] : memref<3x128xf32, #tpu.memory_space<vmem>>, vector<3x128xf32>
    %cst_19 = arith.constant dense<0.000000e+00> : vector<3x128xf32>
    %30 = tpu.matmul %29, %28, %cst_19 {dimension_numbers = #tpu.dot_dimension_numbers<[1], [0], [0], [1], [0, 0, 1, 1], [], []>, precision = #tpu.contract_precision<fp32>} : vector<3x128xf32>, vector<128x128xf32>, vector<3x128xf32> -> vector<3x128xf32>
    %31 = arith.mulf %30, %30 : vector<3x128xf32>
    %cst_20 = arith.constant dense<0.000000e+00> : vector<128xf32>
    %32 = vector.multi_reduction <add>, %31, %cst_20 [0] : vector<3x128xf32> to vector<128xf32>
    %33 = vector.shape_cast %32 : vector<128xf32> to vector<1x128xf32>
    %34 = math.rsqrt %33 : vector<1x128xf32>
    %35 = vector.broadcast %34 : vector<1x128xf32> to vector<3x128xf32>
    %36 = arith.mulf %30, %35 : vector<3x128xf32>
    %c0_21 = arith.constant 0 : index
    %c0_22 = arith.constant 0 : index
    %37 = vector.load %arg7[%c0_21, %c0_22] : memref<3x128xf32, #tpu.memory_space<vmem>>, vector<3x128xf32>
    tpu.vector_store %arg7[%c0_21, %c0_22], %36 {strides = array<i32>} : memref<3x128xf32, #tpu.memory_space<vmem>>, vector<3x128xf32>,
    return
  }
  func.func @transform_0(%arg0: i32) -> (i32, i32) {
    %c0_i32 = arith.constant 0 : i32
    %c0_i32_0 = arith.constant 0 : i32
    return %c0_i32, %arg0 : i32, i32
  }
  func.func @transform_1(%arg0: i32) -> (i32, i32) {
    %c0_i32 = arith.constant 0 : i32
    %c0_i32_0 = arith.constant 0 : i32
    %c0_i32_1 = arith.constant 0 : i32
    return %c0_i32, %c0_i32_0 : i32, i32
  }
  func.func @transform_2(%arg0: i32) -> (i32, i32) {
    %c0_i32 = arith.constant 0 : i32
    %c0_i32_0 = arith.constant 0 : i32
    %c0_i32_1 = arith.constant 0 : i32
    return %c0_i32, %c0_i32_0 : i32, i32
  }
  func.func @transform_3(%arg0: i32) -> (i32, i32) {
    %c0_i32 = arith.constant 0 : i32
    %c0_i32_0 = arith.constant 0 : i32
    %c0_i32_1 = arith.constant 0 : i32
    return %c0_i32, %c0_i32_0 : i32, i32
  }
  func.func @transform_4(%arg0: i32) -> (i32, i32) {
    %c0_i32 = arith.constant 0 : i32
    %c0_i32_0 = arith.constant 0 : i32
    %c0_i32_1 = arith.constant 0 : i32
    return %c0_i32, %c0_i32_0 : i32, i32
  }
  func.func @transform_5(%arg0: i32) -> (i32, i32) {
    %c0_i32 = arith.constant 0 : i32
    %c0_i32_0 = arith.constant 0 : i32
    %c0_i32_1 = arith.constant 0 : i32
    return %c0_i32, %c0_i32_0 : i32, i32
  }
  func.func @transform_6(%arg0: i32) -> (i32, i32) {
    %c0_i32 = arith.constant 0 : i32
    %c0_i32_0 = arith.constant 0 : i32
    return %c0_i32, %arg0 : i32, i32
  }
}

</mosaic_0001>

<bundles_post_ra>
// kernel: tpu_custom_call.1
= control target key start
LH: loop header
LB: loop body
LE: loop exit
PB: predicated region body
PF: predicated region fallthrough
CT: control target
= control target key end

     0   :  { %11 = vsyncpa [#allocation3], 0  ;;  %s5402_s0 = inlined_call_operand.vmem [shape: f32[3,256], index: 0, kind: input, shape index: {}]   ;;  %s5403_s1 = inlined_call_operand.vmem [shape: f32[128,3], index: 1, kind: input, shape index: {}]   ;;  %s5404_s2 = inlined_call_operand.vmem [shape: f32[128,1], index: 2, kind: input, shape index: {}]   ;;  %s5405_s3 = inlined_call_operand.vmem [shape: f32[128,128], index: 3, kind: input, shape index: {}]   ;;  %s5406_s4 = inlined_call_operand.vmem [shape: f32[128,1], index: 4, kind: input, shape index: {}]   ;;  %s5407_s5 = inlined_call_operand.vmem [shape: f32[3,128], index: 5, kind: input, shape index: {}]   ;;  %s5408_s6 = inlined_call_operand.hbm [shape: f32[3,256], index: 6, kind: output, shape index: {}]  }
   0x1   :  { %13 = vsyncpa [#allocation3 + $0x1], 0  ;;  %s3881_s21 = smov 0   ;;  %s3883_s22 = smov 0  }
   0x2   :  { %s3885_s23 = smov 0   ;;  %s3887_s24 = smov 0  }
   0x3 LB: > { %s3902_s25 = sadd.s32 4294967295, %s3838_s24   ;;  %s2835_s26 = sadd.s32 4294967294, %s3838_s24   ;;  %s3838_s24 = sphi %s3887_s24, %s5529_s24   ;;  %s3834_s23 = sphi %s3885_s23, %s5528_s23   ;;  %s3830_s22 = sphi %s3883_s22, %s5527_s22   ;;  %s3826_s21 = sphi %s3881_s21, %s5526_s21  }
   0x4   : > { %s3906_s27 = sadd.s32 1, %s3838_s24   ;;  %s157_s28 = sadd.s32 1, %s3834_s23 }
   0x5   : > { %s154_s29 = ssub.s32 %s3838_s24, %s3906_s27  ;;  %p167_p0 = scmp.ne.s32.totalorder %s3834_s23, %s3830_s22 }
   0x6   : > { %p155_p1 = scmp.eq.s32.totalorder %s154_s29, 0  ;;  %p168_p2 = scmp.eq.s32.totalorder %s3902_s25, 1 }
   0x7   : > { %p173_p3 = scmp.ne.s32.totalorder %s3830_s22, %s3826_s21  ;;  %p174_p4 = scmp.eq.s32.totalorder %s2835_s26, 1 }
   0x8   : > { %s3917_s30 = scalar_select %p155_p1, %s3834_s23, %s157_s28  }
   0x9   : > { %p3919_p5 = por %p168_p2, %p167_p0  ;;  %p3923_p6 = por %p174_p4, %p173_p3 }
   0xa   : > { %p2838_p7 = scmp.ge.s32.totalorder %s3838_s24, 1  ;;  %p214_p8 = scmp.lt.s32.totalorder %s3838_s24, 3 }
   0xc   : > { %p215_p9 = pnand %p2838_p7, %p214_p8 }
   0xe   : > { %218 = sbr.rel (%p215_p9) target bundleno = 1019 (0x3fb), region = 44 }
  0x13   : > { %v277_v0 = vld [vmem:[%s5403_s1 + $0x70] sm:$0xff]  ;;  %v262_v1 = vld [vmem:[%s5404_s2 + $0x78] sm:$0xff]  ;;  %v3840_v2 = vmov 1   ;;  %v3841_v3 = vmov 0   ;;  %v275_v4 = vld [vmem:[%s5403_s1 + $0x60] sm:$0xff]  ;;  %v3842_v10 = vmov 2  }
  0x14   : > { %3735 = vset.pattern.permute.xlu0 %v3840_v2  ;;  %3732 = vset.pattern.permute.xlu1 %v3841_v3  ;;  %v278_v5 = vld [vmem:[%s5403_s1 + $0x78] sm:$0xff]  ;;  %v3947_v6 = vld [vmem:[%s5403_s1 + $0x50] sm:$0xff]  ;;  %v3957_v8 = vld [vmem:[%s5403_s1 + $0x40] sm:$0xff]  ;;  %p243_p10 = scmp.lt.s32.totalorder %s3902_s25, 1  ;;  %vm3844_vm0 = vmmov 0   ;;  %vm2751_vm1 = vcmask 1042432  }
  0x15   : > { %534 = vperm.xlu0 %3735, %v277_v0   ;;  %457 = vperm.xlu1 %3732, %v262_v1   ;;  %v261_v7 = vld [vmem:[%s5404_s2 + $0x70] sm:$0xff]  ;;  %v3970_v11 = vld [vmem:[%s5403_s1 + $0x20] sm:$0xff]  ;;  %v276_v13 = vld [vmem:[%s5403_s1 + $0x68] sm:$0xff]  ;;  %s2845_s11 = sshll.u32 %s3902_s25, 6  ;;  %s3845_s19 = smov [#allocation2]  }
  0x16   : > { %v3963_v9 = vld [vmem:[%s5403_s1 + $0x30] sm:$0xff]  ;;  %v259_v14 = vld [vmem:[%s5404_s2 + $0x60] sm:$0xff]  ;;  %v260_v15 = vld [vmem:[%s5404_s2 + $0x68] sm:$0xff]  ;;  %s244_s9 = scalar_select %p243_p10, %s3902_s25, 1 }
  0x17   : > { %v3977_v12 = vld [vmem:[%s5403_s1 + $0x10] sm:$0xff]  ;;  %v274_v16 = vld [vmem:[%s5403_s1 + $0x58] sm:$0xff]  ;;  %v272_v18 = vld [vmem:[%s5403_s1 + $0x48] sm:$0xff]  ;;  %s2774_s16 = scalar_lea.hbm %s5408_s6, %s2845_s11  ;;  %s3782_s20 = sshll.u32 %s3845_s19, 4  ;;  %s3783_s20 = int_to_ptr.vmem [resolvable:$false] %s3782_s20 }
  0x18   : > { %v258_v17 = vld [vmem:[%s5404_s2 + $0x58] sm:$0xff]  ;;  %v256_v19 = vld [vmem:[%s5404_s2 + $0x48] sm:$0xff]  ;;  %v257_v20 = vld [vmem:[%s5404_s2 + $0x50] sm:$0xff]  ;;  %s2840_s10 = sshll.u32 %s244_s9, 2  ;;  %s240_s9 = sand.u32 1, %s3830_s22  }
  0x19   : > { %526 = vperm.xlu0 %3735, %v275_v4   ;;  %3733 = vset.pattern.permute.xlu1 %v3840_v2  ;;  %v270_v21 = vld [vmem:[%s5403_s1 + $0x38] sm:$0xff]  ;;  %v268_v23 = vld [vmem:[%s5403_s1 + $0x28] sm:$0xff]  ;;  %v255_v27 = vld [vmem:[%s5404_s2 + $0x40] sm:$0xff]  ;;  %s246_s13 = scalar_lea.vmem %s5402_s0, %s2840_s10  ;;  %s2839_s10 = sshll.u32 %s240_s9, 2 }
  0x1a   : > { %538 = vperm.xlu1 %3733, %v278_v5   ;;  %v254_v22 = vld [vmem:[%s5404_s2 + $0x38] sm:$0xff]  ;;  %v252_v24 = vld [vmem:[%s5404_s2 + $0x28] sm:$0xff]  ;;  %v247_v30 = vld [vmem:[%s5404_s2] sm:$0xff]  ;;  %s242_s12 = scalar_lea.vmem [#allocation2], %s2839_s10  ;;  %s2763_s17 = scalar_lea.sflag [#allocation3], %s240_s9 }
  0x1b   : > { %v4033_v25 = vld [vmem:[%s5403_s1 + $0x18] sm:$0xff]  ;;  %v4047_v28 = vld [vmem:[%s5403_s1 + $0x8] sm:$0xff]  ;;  %v253_v31 = vld [vmem:[%s5404_s2 + $0x30] sm:$0xff]  ;;  %s3784_s25 = scalar_lea.vmem %s3783_s20, 128 }
  0x1c   : > { %v250_v26 = vld [vmem:[%s5404_s2 + $0x18] sm:$0xff]  ;;  %v248_v29 = vld [vmem:[%s5404_s2 + $0x8] sm:$0xff]  ;;  %v251_v37 = vld [vmem:[%s5404_s2 + $0x20] sm:$0xff] }
  0x1d   : > { %518 = vperm.xlu0 %3735, %v3947_v6   ;;  %v4104_v46 = vld [vmem:[%s246_s13 + $0x1] ss:$0 sm:$0xff]  ;;  %v4106_v47 = vld [vmem:[%s246_s13] ss:$0 sm:$0xff]  ;;  %v4109_v51 = vld [vmem:[%s246_s13 + $0x2] ss:$0 sm:$0xff] }
  0x1e   : > { %3734 = vset.pattern.permute.xlu1 %v3841_v3  ;;  %v249_v59 = vld [vmem:[%s5404_s2 + $0x10] sm:$0xff]  ;;  %s2776_s13 = sshll.u32 %s242_s12, 4  ;;  %s2777_s13 = int_to_ptr.vmem [resolvable:$true] %s2776_s13 }
  0x1f   : > { %452 = vperm.xlu1 %3734, %v261_v7   ;;  %s3778_s18 = scalar_lea.vmem %s2777_s13, 64  ;;  %p3785_p0 = scmp.lt.s32.totalorder %s2777_s13, %s3783_s20 }
  0x20   : > { %p3779_p11 = scmp.ne.s32.totalorder %s2777_s13, %s3778_s18  ;;  %p3786_p1 = scmp.lt.s32.totalorder %s3784_s25, %s3778_s18 }
  0x21   : > { %510 = vperm.xlu0 %3735, %v3957_v8  }
  0x22   : > { %p3780_p12 = pnand %p3779_p11, %p3919_p5  ;;  %p3787_p2 = por %p3786_p1, %p3785_p0 }
  0x23   : > { %3736 = vset.pattern.permute.xlu1 %v3842_v10 }
  0x24   : > { %639 = vperm.xlu1 %3736, %v278_v5   ;;  %p3781_p13 = pneg %p3780_p12 }
  0x25   : > { %502 = vperm.xlu0 %3735, %v3963_v9  }
  0x26   : > { %p3788_p3 = pnand %p3787_p2, %p3781_p13 }
  0x28   : > { %3737 = vset.pattern.permute.xlu1 %v3841_v3 }
  0x29   : > { %494 = vperm.xlu0 %3735, %v3970_v11   ;;  %342 = vperm.xlu1 %3737, %v275_v4  }
  0x2d   : > { %486 = vperm.xlu0 %3735, %v3977_v12   ;;  %3738 = vset.pattern.permute.xlu1 %v3840_v2 }
  0x2e   : > { %530 = vperm.xlu1 %3738, %v276_v13  }
  0x31   : > { %3766 = vset.pattern.permute.xlu0 %v3841_v3 }
  0x32   : > { %357 = vperm.xlu0 %3766, %v278_v5   ;;  %3739 = vset.pattern.permute.xlu1 %v3842_v10 }
  0x33   : > { %635 = vperm.xlu1 %3739, %v277_v0  }
  0x36   : > { %352 = vperm.xlu0 %3766, %v277_v0  }
  0x37   : > { %3740 = vset.pattern.permute.xlu1 %v3841_v3 }
  0x38   : > { %442 = vperm.xlu1 %3740, %v259_v14  }
  0x3a   : > { %347 = vperm.xlu0 %3766, %v276_v13  }
  0x3c   : > { %3741 = vset.pattern.permute.xlu1 %v3842_v10 }
  0x3d   : > { %631 = vperm.xlu1 %3741, %v276_v13  }
  0x3e   : > { %447 = vperm.xlu0 %3766, %v260_v15  }
  0x41   : > { %3742 = vset.pattern.permute.xlu1 %v3841_v3 }
  0x42   : > { %332 = vperm.xlu1 %3742, %v3947_v6   ;;  %337 = vperm.xlu0 %3766, %v274_v16  }
  0x46   : > { %3743 = vset.pattern.permute.xlu1 %v3840_v2  ;;  %437 = vperm.xlu0 %3766, %v258_v17  }
  0x47   : > { %522 = vperm.xlu1 %3743, %v274_v16  }
  0x4a   : > { %327 = vperm.xlu0 %3766, %v272_v18  }
  0x4b   : > { %3744 = vset.pattern.permute.xlu1 %v3842_v10 }
  0x4c   : > { %627 = vperm.xlu1 %3744, %v275_v4  }
  0x4e   : > { %427 = vperm.xlu0 %3766, %v256_v19   ;;  %v263_v19 = vld [vmem:[%s5403_s1] sm:$0xff] }
  0x50   : > { %3745 = vset.pattern.permute.xlu1 %v3841_v3 }
  0x51   : > { %432 = vperm.xlu1 %3745, %v257_v20  }
  0x52   : > { %317 = vperm.xlu0 %3766, %v270_v21  }
  0x55   : > { %3746 = vset.pattern.permute.xlu1 %v3842_v10 }
  0x56   : > { %623 = vperm.xlu1 %3746, %v274_v16   ;;  %417 = vperm.xlu0 %3766, %v254_v22  }
  0x5a   : > { %3747 = vset.pattern.permute.xlu1 %v3841_v3  ;;  %307 = vperm.xlu0 %3766, %v268_v23  }
  0x5b   : > { %322 = vperm.xlu1 %3747, %v3957_v8  }
  0x5e   : > { %407 = vperm.xlu0 %3766, %v252_v24  }
  0x5f   : > { %3748 = vset.pattern.permute.xlu1 %v3840_v2 }
  0x60   : > { %514 = vperm.xlu1 %3748, %v272_v18  }
  0x62   : > { %297 = vperm.xlu0 %3766, %v4033_v25  }
  0x64   : > { %3749 = vset.pattern.permute.xlu1 %v3842_v10 }
  0x65   : > { %619 = vperm.xlu1 %3749, %v3947_v6  }
  0x66   : > { %397 = vperm.xlu0 %3766, %v250_v26  }
  0x69   : > { %3750 = vset.pattern.permute.xlu1 %v3841_v3 }
  0x6a   : > { %422 = vperm.xlu1 %3750, %v255_v27   ;;  %287 = vperm.xlu0 %3766, %v4047_v28  }
  0x6e   : > { %3751 = vset.pattern.permute.xlu1 %v3842_v10  ;;  %387 = vperm.xlu0 %3766, %v248_v29  }
  0x6f   : > { %615 = vperm.xlu1 %3751, %v272_v18  }
  0x72   : > { %382 = vperm.xlu0 %3766, %v247_v30  }
  0x73   : > { %3752 = vset.pattern.permute.xlu1 %v3841_v3 }
  0x74   : > { %312 = vperm.xlu1 %3752, %v3963_v9  }
  0x76   : > { %3772 = vset.pattern.permute.xlu0 %v3842_v10 }
  0x77   : > { %583 = vperm.xlu0 %3772, %v4047_v28  }
  0x78   : > { %3753 = vset.pattern.permute.xlu1 %v3840_v2 }
  0x79   : > { %506 = vperm.xlu1 %3753, %v270_v21  }
  0x7b   : > { %3775 = vset.pattern.permute.xlu0 %v3841_v3 }
  0x7d   : > { %3754 = vset.pattern.permute.xlu1 %v3842_v10 }
  0x7e   : > { %611 = vperm.xlu1 %3754, %v3957_v8  }
  0x82   : > { %3755 = vset.pattern.permute.xlu1 %v3841_v3 }
  0x83   : > { %412 = vperm.xlu1 %3755, %v253_v31  }
  0x87   : > { %3756 = vset.pattern.permute.xlu1 %v3842_v10 }
  0x88   : > { %607 = vperm.xlu1 %3756, %v270_v21  }
  0x8c   : > { %3757 = vset.pattern.permute.xlu1 %v3841_v3 }
  0x8d   : > { %302 = vperm.xlu1 %3757, %v3970_v11  }
  0x90   : > { %v458_v32 = vpop.permute.xlu1 %457  ;;  %v535_v33 = vpop.permute.xlu0 %534 }
  0x91   : > { %3758 = vset.pattern.permute.xlu1 %v3840_v2  ;;  %v559_v55 = vmul.f32 %v4104_v46, %v535_v33 }
  0x92   : > { %498 = vperm.xlu1 %3758, %v268_v23  }
  0x94   : > { %v4074_v34 = vpop.permute.xlu0 %526 }
  0x95   : > { %v539_v35 = vpop.permute.xlu1 %538  ;;  %v557_v33 = vmul.f32 %v4104_v46, %v4074_v34 }
  0x96   : > { %3759 = vset.pattern.permute.xlu1 %v3842_v10  ;;  %v560_v52 = vmul.f32 %v4104_v46, %v539_v35 }
  0x97   : > { %603 = vperm.xlu1 %3759, %v3963_v9  }
  0x98   : > { %v4078_v36 = vpop.permute.xlu0 %518 }
  0x9a   : > { %v453_v38 = vpop.permute.xlu1 %452 }
  0x9b   : > { %3760 = vset.pattern.permute.xlu1 %v3841_v3 }
  0x9c   : > { %402 = vperm.xlu1 %3760, %v251_v37   ;;  %v4084_v39 = vpop.permute.xlu0 %510 }
  0x9f   : > { %v640_v40 = vpop.permute.xlu1 %639 }
  0xa0   : > { %3761 = vset.pattern.permute.xlu1 %v3842_v10  ;;  %v4088_v41 = vpop.permute.xlu0 %502  ;;  %v661_v56 = vmul.f32 %v4109_v51, %v640_v40 }
  0xa1   : > { %599 = vperm.xlu1 %3761, %v268_v23  }
  0xa4   : > { %v4091_v42 = vpop.permute.xlu1 %342  ;;  %v4093_v43 = vpop.permute.xlu0 %494 }
  0xa5   : > { %3762 = vset.pattern.permute.xlu1 %v3841_v3  ;;  %v376_v29 = vmul.f32 %v4106_v47, %v4091_v42 }
  0xa6   : > { %292 = vperm.xlu1 %3762, %v3977_v12  }
  0xa8   : > { %v4097_v44 = vpop.permute.xlu0 %486 }
  0xa9   : > { %v531_v45 = vpop.permute.xlu1 %530 }
  0xaa   : > { %3763 = vset.pattern.permute.xlu1 %v3840_v2 }
  0xab   : > { %490 = vperm.xlu1 %3763, %v4033_v25  }
  0xad   : > { %v358_v48 = vpop.permute.xlu0 %357 }
  0xae   : > { %v379_v49 = vmul.f32 %v4106_v47, %v358_v48  ;;  %v636_v50 = vpop.permute.xlu1 %635 }
  0xaf   : > { %3764 = vset.pattern.permute.xlu1 %v3842_v10  ;;  %v660_v1 = vmul.f32 %v4109_v51, %v636_v50 }
  0xb0   : > { %v475_v53 = vadd.f32 %v458_v32, %v379_v49  ;;  %595 = vperm.xlu1 %3764, %v3970_v11   ;;  %v558_v11 = vmul.f32 %v4104_v46, %v531_v45 }
  0xb1   : > { %v353_v54 = vpop.permute.xlu0 %352 }
  0xb2   : > { %v576_v57 = vadd.f32 %v560_v52, %v475_v53  ;;  %v378_v58 = vmul.f32 %v4106_v47, %v353_v54 }
  0xb3   : > { %v443_v60 = vpop.permute.xlu1 %442 }
  0xb4   : > { %v677_v61 = vadd.f32 %v661_v56, %v576_v57  ;;  %v474_v62 = vadd.f32 %v453_v38, %v378_v58  ;;  %3765 = vset.pattern.permute.xlu1 %v3841_v3  ;;  %v472_v35 = vadd.f32 %v443_v60, %v376_v29 }
  0xb5   : > { %v348_v63 = vpop.permute.xlu0 %347  ;;  %392 = vperm.xlu1 %3765, %v249_v59  }
  0xb6   : > { %v693_v0 = vmax.f32 %v677_v61, 0.0  ;;  %v575_v4 = vadd.f32 %v559_v55, %v474_v62  ;;  %v377_v5 = vmul.f32 %v4106_v47, %v348_v63  ;;  %v573_v34 = vadd.f32 %v557_v33, %v472_v35 }
  0xb8   : > { %v4123_v6 = vand.u32 4294901760, %v693_v0  ;;  %v676_v7 = vadd.f32 %v660_v1, %v575_v4  ;;  %v632_v8 = vpop.permute.xlu1 %631 }
  0xb9   : > { %v448_v9 = vpop.permute.xlu0 %447  ;;  %3767 = vset.pattern.permute.xlu1 %v3842_v10  ;;  %v659_v17 = vmul.f32 %v4109_v51, %v632_v8 }
  0xba   : > { %v4128_v13 = vsub.f32 %v693_v0, %v4123_v6  ;;  %v692_v14 = vmax.f32 %v676_v7, 0.0  ;;  %v473_v15 = vadd.f32 %v448_v9, %v377_v5  ;;  %591 = vperm.xlu1 %3767, %v4033_v25   ;;  %3142 = vmatprep.subr.mxu0 %v4123_v6 }
  0xbb   : > { %3143 = vmatpush3.msra.mxu0 %v4123_v6 }
  0xbc   : > { %v4133_v16 = vand.u32 4294901760, %v692_v14  ;;  %v574_v18 = vadd.f32 %v558_v11, %v473_v15  ;;  %v4140_v20 = vand.u32 4294901760, %v4128_v13 }
  0xbd   : > { %v4142_v21 = vpop.permute.xlu1 %332  ;;  %v338_v40 = vpop.permute.xlu0 %337 }
  0xbe   : > { %v4145_v22 = vsub.f32 %v692_v14, %v4133_v16  ;;  %v675_v23 = vadd.f32 %v659_v17, %v574_v18  ;;  %3768 = vset.pattern.permute.xlu1 %v3841_v3  ;;  %3144 = vmatprep.subr.mxu0 %v4133_v16  ;;  %v1051_v24 = vsub.f32 %v4128_v13, %v4140_v20 }
  0xbf   : > { %282 = vperm.xlu1 %3768, %v263_v19   ;;  %3145 = vmatpush3.msra.mxu0 %v4133_v16  ;;  %v375_v49 = vmul.f32 %v4106_v47, %v338_v40  ;;  %v374_v17 = vmul.f32 %v4106_v47, %v4142_v21 }
  0xc0   : > { %v691_v25 = vmax.f32 %v675_v23, 0.0  ;;  %v4153_v26 = vand.u32 4294901760, %v4145_v22  ;;  %v1052_v27 = vand.u32 4294901760, %v1051_v24 }
  0xc1   : > { %v438_v53 = vpop.permute.xlu0 %437 }
  0xc2   : > { %v4157_v30 = vand.u32 4294901760, %v691_v25  ;;  %v523_v31 = vpop.permute.xlu1 %522  ;;  %v1058_v32 = vsub.f32 %v4145_v22, %v4153_v26  ;;  %3198 = vmatprep.subr.mxu1 %v1052_v27  ;;  %v471_v57 = vadd.f32 %v438_v53, %v375_v49 }
  0xc3   : > { %3769 = vset.pattern.permute.xlu1 %v3840_v2  ;;  %3199 = vmatpush3.msra.mxu1 %v1052_v27  ;;  %v556_v56 = vmul.f32 %v4104_v46, %v523_v31 }
  0xc4   : > { %v4165_v37 = vsub.f32 %v691_v25, %v4157_v30  ;;  %482 = vperm.xlu1 %3769, %v4047_v28   ;;  %v1059_v38 = vand.u32 4294901760, %v1058_v32  ;;  %3146 = vmatprep.subr.mxu0 %v4157_v30 }
  0xc5   : > { %3147 = vmatpush3.msra.mxu0 %v4157_v30  ;;  %v572_v62 = vadd.f32 %v556_v56, %v471_v57  ;;  %v328_v24 = vpop.permute.xlu0 %327 }
  0xc6   : > { %3200 = vmatprep.subr.mxu1 %v1059_v38  ;;  %v4171_v42 = vand.u32 4294901760, %v4165_v37  ;;  %v373_v21 = vmul.f32 %v4106_v47, %v328_v24 }
  0xc7   : > { %v628_v45 = vpop.permute.xlu1 %627  ;;  %3201 = vmatpush3.msra.mxu1 %v1059_v38 }
  0xc8   : > { %v658_v48 = vmul.f32 %v4109_v51, %v628_v45  ;;  %3770 = vset.pattern.permute.xlu1 %v3842_v10  ;;  %v1065_v28 = vsub.f32 %v4165_v37, %v4171_v42 }
  0xc9   : > { %587 = vperm.xlu1 %3770, %v3977_v12   ;;  %v694_v12 = vld [vmem:[%s5405_s3] sm:$0xff]  ;;  %v428_v35 = vpop.permute.xlu0 %427 }
  0xca   : > { %v674_v50 = vadd.f32 %v658_v48, %v573_v34  ;;  %v1066_v52 = vand.u32 4294901760, %v1065_v28  ;;  %v4186_v59 = vand.u32 4294901760, %v694_v12  ;;  %v469_v45 = vadd.f32 %v428_v35, %v373_v21 }
  0xcc   : > { %v690_v54 = vmax.f32 %v674_v50, 0.0  ;;  %v433_v55 = vpop.permute.xlu1 %432  ;;  %3202 = vmatprep.subr.mxu1 %v1066_v52  ;;  %5453 = vst [vmem:[#allocation5_spill] sm:$0xff] %v4186_v59  ;;  %3230 = vmatprep.mubr.f32.mxu1 %v4186_v59 }
  0xcd   : > { %3771 = vset.pattern.permute.xlu1 %v3840_v2  ;;  %3203 = vmatpush3.msra.mxu1 %v1066_v52  ;;  %v4194_v2 = vsub.f32 %v694_v12, %v4186_v59  ;;  %v470_v23 = vadd.f32 %v433_v55, %v374_v17 }
  0xce   : > { %v4181_v58 = vand.u32 4294901760, %v690_v54  ;;  %478 = vperm.xlu1 %3771, %v263_v19  }
  0xcf   : > { %v5409_v1 = vand.u32 4294901760, %v4194_v2 }
  0xd0   : > { %v4189_v60 = vsub.f32 %v690_v54, %v4181_v58  ;;  %3148 = vmatprep.subr.mxu0 %v4181_v58 }
  0xd1   : > { %v624_v61 = vpop.permute.xlu1 %623  ;;  %3149 = vmatpush3.msra.mxu0 %v4181_v58  ;;  %v890_v7 = vsub.f32 %v4194_v2, %v5409_v1 }
  0xd2   : > { %v657_v63 = vmul.f32 %v4109_v51, %v624_v61  ;;  %3773 = vset.pattern.permute.xlu1 %v3842_v10  ;;  %v4200_v0 = vand.u32 4294901760, %v4189_v60 }
  0xd3   : > { %579 = vperm.xlu1 %3773, %v263_v19   ;;  %v891_v14 = vand.u32 4294901760, %v890_v7 }
  0xd4   : > { %5454 = vst [vmem:[#allocation6_spill] sm:$0xff] %v4200_v0  ;;  %v673_v4 = vadd.f32 %v657_v63, %v572_v62  ;;  %v1072_v5 = vsub.f32 %v4189_v60, %v4200_v0 }
  0xd5   : > { %3174 = vmatprep.mubr.f32.mxu0 %v891_v14 }
  0xd6   : > { %v689_v8 = vmax.f32 %v673_v4, 0.0  ;;  %v323_v9 = vpop.permute.xlu1 %322  ;;  %v1073_v11 = vand.u32 4294901760, %v1072_v5  ;;  %v553_v5 = vmul.f32 %v4104_v46, %v4084_v39 }
  0xd7   : > { %3774 = vset.pattern.permute.xlu1 %v3841_v3  ;;  %v555_v3 = vmul.f32 %v4104_v46, %v4078_v36  ;;  %v372_v62 = vmul.f32 %v4106_v47, %v323_v9 }
  0xd8   : > { %v4209_v10 = vand.u32 4294901760, %v689_v8  ;;  %3204 = vmatprep.subr.mxu1 %v1073_v11 }
  0xd9   : > { %3205 = vmatpush3.msra.mxu1 %v1073_v11  ;;  %v571_v31 = vadd.f32 %v555_v3, %v470_v23  ;;  %v318_v11 = vpop.permute.xlu0 %317 }
  0xda   : > { %v4212_v15 = vsub.f32 %v689_v8, %v4209_v10  ;;  %3150 = vmatprep.subr.mxu0 %v4209_v10  ;;  %v371_v9 = vmul.f32 %v4106_v47, %v318_v11 }
  0xdb   : > { %v515_v18 = vpop.permute.xlu1 %514  ;;  %3151 = vmatpush3.msra.mxu0 %v4209_v10 }
  0xdc   : > { %v4219_v19 = vand.u32 4294901760, %v4212_v15  ;;  %v554_v36 = vmul.f32 %v4104_v46, %v515_v18 }
  0xde   : > { %5455 = vst [vmem:[#allocation7_spill] sm:$0xff] %v4219_v19  ;;  %v1079_v25 = vsub.f32 %v4212_v15, %v4219_v19  ;;  %v570_v49 = vadd.f32 %v554_v36, %v469_v45 }
  0xe0   : > { %v620_v27 = vpop.permute.xlu1 %619  ;;  %v1080_v29 = vand.u32 4294901760, %v1079_v25 }
  0xe1   : > { %v656_v32 = vmul.f32 %v4109_v51, %v620_v27  ;;  %v418_v27 = vpop.permute.xlu0 %417 }
  0xe2   : > { %3206 = vmatprep.subr.mxu1 %v1080_v29 }
  0xe3   : > { %v672_v33 = vadd.f32 %v656_v32, %v571_v31  ;;  %3207 = vmatpush3.msra.mxu1 %v1080_v29  ;;  %v467_v29 = vadd.f32 %v418_v27, %v371_v9 }
  0xe5   : > { %v688_v38 = vmax.f32 %v672_v33, 0.0  ;;  %v423_v40 = vpop.permute.xlu1 %422 }
  0xe6   : > { %v468_v7 = vadd.f32 %v423_v40, %v372_v62 }
  0xe7   : > { %v4228_v34 = vand.u32 4294901760, %v688_v38 }
  0xe8   : > { %v569_v18 = vadd.f32 %v553_v5, %v468_v7  ;;  %v551_v5 = vmul.f32 %v4104_v46, %v4088_v41 }
  0xe9   : > { %v4231_v48 = vsub.f32 %v688_v38, %v4228_v34  ;;  %3152 = vmatprep.subr.mxu0 %v4228_v34 }
  0xea   : > { %v616_v28 = vpop.permute.xlu1 %615  ;;  %3153 = vmatpush3.msra.mxu0 %v4228_v34 }
  0xeb   : > { %v655_v50 = vmul.f32 %v4109_v51, %v616_v28  ;;  %v4237_v52 = vand.u32 4294901760, %v4231_v48 }
  0xed   : > { %5456 = vst [vmem:[#allocation8_spill] sm:$0xff] %v4237_v52  ;;  %v671_v53 = vadd.f32 %v655_v50, %v570_v49  ;;  %v1086_v54 = vsub.f32 %v4231_v48, %v4237_v52 }
  0xef   : > { %v687_v55 = vmax.f32 %v671_v53, 0.0  ;;  %v313_v56 = vpop.permute.xlu1 %312  ;;  %v1087_v57 = vand.u32 4294901760, %v1086_v54 }
  0xf0   : > { %v370_v54 = vmul.f32 %v4106_v47, %v313_v56 }
  0xf1   : > { %v4241_v12 = vand.u32 4294901760, %v687_v55  ;;  %3208 = vmatprep.subr.mxu1 %v1087_v57 }
  0xf2   : > { %3209 = vmatpush3.msra.mxu1 %v1087_v57 }
  0xf3   : > { %v4244_v61 = vsub.f32 %v687_v55, %v4241_v12  ;;  %3154 = vmatprep.subr.mxu0 %v4241_v12 }
  0xf4   : > { %v507_v63 = vpop.permute.xlu1 %506  ;;  %3155 = vmatpush3.msra.mxu0 %v4241_v12 }
  0xf5   : > { %v4250_v4 = vand.u32 4294901760, %v4244_v61  ;;  %v552_v39 = vmul.f32 %v4104_v46, %v507_v63 }
  0xf7   : > { %5457 = vst [vmem:[#allocation9_spill] sm:$0xff] %v4250_v4  ;;  %v1093_v8 = vsub.f32 %v4244_v61, %v4250_v4  ;;  %v568_v33 = vadd.f32 %v552_v39, %v467_v29  ;;  %v723_v39 = vld [vmem:[%s5406_s4 + $0x68] sm:$0xff] }
  0xf9   : > { %v612_v14 = vpop.permute.xlu1 %611  ;;  %v1094_v17 = vand.u32 4294901760, %v1093_v8 }
  0xfa   : > { %v654_v3 = vmul.f32 %v4109_v51, %v612_v14 }
  0xfb   : > { %3210 = vmatprep.subr.mxu1 %v1094_v17 }
  0xfc   : > { %v670_v23 = vadd.f32 %v654_v3, %v569_v18  ;;  %3211 = vmatpush3.msra.mxu1 %v1094_v17  ;;  %v308_v17 = vpop.permute.xlu0 %307  ;;  %v725_v18 = vld [vmem:[%s5406_s4 + $0x78] sm:$0xff] }
  0xfd   : > { %803 = vperm.xlu1 %3774, %v725_v18   ;;  %v369_v3 = vmul.f32 %v4106_v47, %v308_v17  ;;  %v720_v18 = vld [vmem:[%s5406_s4 + $0x50] sm:$0xff] }
  0xfe   : > { %v686_v24 = vmax.f32 %v670_v23, 0.0  ;;  %v413_v25 = vpop.permute.xlu1 %412 }
  0xff   : > { %v466_v62 = vadd.f32 %v413_v25, %v370_v54 }
 0x100   : > { %v4259_v31 = vand.u32 4294901760, %v686_v24  ;;  %v408_v25 = vpop.permute.xlu0 %407 }
 0x101   : > { %v567_v11 = vadd.f32 %v551_v5, %v466_v62  ;;  %v465_v27 = vadd.f32 %v408_v25, %v369_v3  ;;  %793 = vperm.xlu1 %3774, %v723_v39   ;;  %v724_v5 = vld [vmem:[%s5406_s4 + $0x70] sm:$0xff]  ;;  %v721_v3 = vld [vmem:[%s5406_s4 + $0x58] sm:$0xff] }
 0x102   : > { %v4262_v32 = vsub.f32 %v686_v24, %v4259_v31  ;;  %3156 = vmatprep.subr.mxu0 %v4259_v31  ;;  %798 = vperm.xlu0 %3775, %v724_v5  }
 0x103   : > { %v608_v21 = vpop.permute.xlu1 %607  ;;  %3157 = vmatpush3.msra.mxu0 %v4259_v31 }
 0x104   : > { %v653_v35 = vmul.f32 %v4109_v51, %v608_v21  ;;  %v4268_v38 = vand.u32 4294901760, %v4262_v32 }
 0x106   : > { %5458 = vst [vmem:[#allocation10_spill] sm:$0xff] %v4268_v38  ;;  %v669_v40 = vadd.f32 %v653_v35, %v568_v33  ;;  %v1100_v36 = vsub.f32 %v4262_v32, %v4268_v38  ;;  %783 = vperm.xlu0 %3775, %v721_v3  }
 0x108   : > { %v685_v45 = vmax.f32 %v669_v40, 0.0  ;;  %v303_v28 = vpop.permute.xlu1 %302  ;;  %v1101_v49 = vand.u32 4294901760, %v1100_v36 }
 0x10a   : > { %v4272_v50 = vand.u32 4294901760, %v685_v45  ;;  %3212 = vmatprep.subr.mxu1 %v1101_v49 }
 0x10b   : > { %3213 = vmatpush3.msra.mxu1 %v1101_v49  ;;  %v298_v49 = vpop.permute.xlu0 %297 }
 0x10c   : > { %v4275_v53 = vsub.f32 %v685_v45, %v4272_v50  ;;  %3158 = vmatprep.subr.mxu0 %v4272_v50 }
 0x10d   : > { %v499_v55 = vpop.permute.xlu1 %498  ;;  %3159 = vmatpush3.msra.mxu0 %v4272_v50 }
 0x10e   : > { %v4281_v57 = vand.u32 4294901760, %v4275_v53  ;;  %v550_v41 = vmul.f32 %v4104_v46, %v499_v55 }
 0x10f   : > { %v398_v17 = vpop.permute.xlu0 %397 }
 0x110   : > { %5459 = vst [vmem:[#allocation11_spill] sm:$0xff] %v4281_v57  ;;  %v1107_v63 = vsub.f32 %v4275_v53, %v4281_v57  ;;  %v566_v33 = vadd.f32 %v550_v41, %v465_v27  ;;  %v549_v41 = vmul.f32 %v4104_v46, %v4093_v43  ;;  %v367_v43 = vmul.f32 %v4106_v47, %v298_v49 }
 0x112   : > { %v604_v7 = vpop.permute.xlu1 %603  ;;  %v1108_v8 = vand.u32 4294901760, %v1107_v63  ;;  %v722_v63 = vld [vmem:[%s5406_s4 + $0x60] sm:$0xff]  ;;  %v463_v3 = vadd.f32 %v398_v17, %v367_v43 }
 0x113   : > { %v652_v14 = vmul.f32 %v4109_v51, %v604_v7  ;;  %788 = vperm.xlu1 %3774, %v722_v63  }
 0x114   : > { %3214 = vmatprep.subr.mxu1 %v1108_v8 }
 0x115   : > { %v668_v56 = vadd.f32 %v652_v14, %v567_v11  ;;  %3215 = vmatpush3.msra.mxu1 %v1108_v8  ;;  %v368_v11 = vmul.f32 %v4106_v47, %v303_v28 }
 0x117   : > { %v684_v9 = vmax.f32 %v668_v56, 0.0  ;;  %v403_v23 = vpop.permute.xlu1 %402  ;;  %778 = vperm.xlu1 %3774, %v720_v18   ;;  %v717_v18 = vld [vmem:[%s5406_s4 + $0x38] sm:$0xff] }
 0x119   : > { %v4293_v24 = vand.u32 4294901760, %v684_v9 }
 0x11b   : > { %v4296_v29 = vsub.f32 %v684_v9, %v4293_v24  ;;  %3160 = vmatprep.subr.mxu0 %v4293_v24  ;;  %v464_v9 = vadd.f32 %v403_v23, %v368_v11  ;;  %v719_v23 = vld [vmem:[%s5406_s4 + $0x48] sm:$0xff]  ;;  %v716_v11 = vld [vmem:[%s5406_s4 + $0x30] sm:$0xff] }
 0x11c   : > { %v600_v21 = vpop.permute.xlu1 %599  ;;  %3161 = vmatpush3.msra.mxu0 %v4293_v24  ;;  %773 = vperm.xlu0 %3775, %v719_v23  }
 0x11d   : > { %v651_v35 = vmul.f32 %v4109_v51, %v600_v21  ;;  %v4305_v40 = vand.u32 4294901760, %v4296_v29  ;;  %v565_v39 = vadd.f32 %v549_v41, %v464_v9 }
 0x11f   : > { %5460 = vst [vmem:[#allocation12_spill] sm:$0xff] %v4305_v40  ;;  %v667_v36 = vadd.f32 %v651_v35, %v566_v33  ;;  %v1114_v45 = vsub.f32 %v4296_v29, %v4305_v40  ;;  %v288_v33 = vpop.permute.xlu0 %287  ;;  %v718_v35 = vld [vmem:[%s5406_s4 + $0x40] sm:$0xff] }
 0x120   : > { %768 = vperm.xlu1 %3774, %v718_v35   ;;  %763 = vperm.xlu0 %3775, %v717_v18   ;;  %v365_v43 = vmul.f32 %v4106_v47, %v288_v33 }
 0x121   : > { %v683_v54 = vmax.f32 %v667_v36, 0.0  ;;  %v4309_v55 = vpop.permute.xlu1 %292  ;;  %v1115_v62 = vand.u32 4294901760, %v1114_v45 }
 0x122   : > { %v366_v33 = vmul.f32 %v4106_v47, %v4309_v55 }
 0x123   : > { %v4317_v7 = vand.u32 4294901760, %v683_v54  ;;  %3216 = vmatprep.subr.mxu1 %v1115_v62  ;;  %v388_v5 = vpop.permute.xlu0 %387 }
 0x124   : > { %3217 = vmatpush3.msra.mxu1 %v1115_v62  ;;  %758 = vperm.xlu1 %3774, %v716_v11   ;;  %v713_v11 = vld [vmem:[%s5406_s4 + $0x18] sm:$0xff] }
 0x125   : > { %v4320_v8 = vsub.f32 %v683_v54, %v4317_v7  ;;  %3162 = vmatprep.subr.mxu0 %v4317_v7 }
 0x126   : > { %v491_v14 = vpop.permute.xlu1 %490  ;;  %3163 = vmatpush3.msra.mxu0 %v4317_v7 }
 0x127   : > { %v4326_v56 = vand.u32 4294901760, %v4320_v8  ;;  %v548_v62 = vmul.f32 %v4104_v46, %v491_v14 }
 0x129   : > { %5461 = vst [vmem:[#allocation13_spill] sm:$0xff] %v4326_v56  ;;  %v1121_v28 = vsub.f32 %v4320_v8, %v4326_v56  ;;  %v564_v14 = vadd.f32 %v548_v62, %v463_v3  ;;  %v712_v62 = vld [vmem:[%s5406_s4 + $0x10] sm:$0xff] }
 0x12b   : > { %v596_v25 = vpop.permute.xlu1 %595  ;;  %v1122_v27 = vand.u32 4294901760, %v1121_v28 }
 0x12c   : > { %v650_v21 = vmul.f32 %v4109_v51, %v596_v25 }
 0x12d   : > { %3218 = vmatprep.subr.mxu1 %v1122_v27 }
 0x12e   : > { %v666_v36 = vadd.f32 %v650_v21, %v565_v39  ;;  %3219 = vmatpush3.msra.mxu1 %v1122_v27  ;;  %v714_v27 = vld [vmem:[%s5406_s4 + $0x20] sm:$0xff]  ;;  %v715_v39 = vld [vmem:[%s5406_s4 + $0x28] sm:$0xff]  ;;  %v383_v21 = vpop.permute.xlu0 %382 }
 0x12f   : > { %748 = vperm.xlu1 %3774, %v714_v27   ;;  %753 = vperm.xlu0 %3775, %v715_v39  }
 0x130   : > { %v682_v45 = vmax.f32 %v666_v36, 0.0  ;;  %v393_v54 = vpop.permute.xlu1 %392 }
 0x131   : > { %v462_v55 = vadd.f32 %v393_v54, %v366_v33 }
 0x132   : > { %v4347_v63 = vand.u32 4294901760, %v682_v45  ;;  %v584_v18 = vpop.permute.xlu0 %583 }
 0x133   : > { %738 = vperm.xlu1 %3774, %v712_v62   ;;  %743 = vperm.xlu0 %3775, %v713_v11   ;;  %v647_v27 = vmul.f32 %v4109_v51, %v584_v18 }
 0x134   : > { %v4356_v9 = vsub.f32 %v682_v45, %v4347_v63  ;;  %3164 = vmatprep.subr.mxu0 %v4347_v63 }
 0x135   : > { %v592_v49 = vpop.permute.xlu1 %591  ;;  %3165 = vmatpush3.msra.mxu0 %v4347_v63 }
 0x136   : > { %v649_v28 = vmul.f32 %v4109_v51, %v592_v49  ;;  %v4362_v41 = vand.u32 4294901760, %v4356_v9 }
 0x138   : > { %5462 = vst [vmem:[#allocation14_spill] sm:$0xff] %v4362_v41  ;;  %v665_v25 = vadd.f32 %v649_v28, %v564_v14  ;;  %v1128_v17 = vsub.f32 %v4356_v9, %v4362_v41  ;;  %v710_v14 = vld [vmem:[%s5406_s4] sm:$0xff]  ;;  %v711_v28 = vld [vmem:[%s5406_s4 + $0x8] sm:$0xff] }
 0x139   : > { %728 = vperm.xlu1 %3774, %v710_v14   ;;  %733 = vperm.xlu0 %3775, %v711_v28  }
 0x13a   : > { %v681_v35 = vmax.f32 %v665_v25, 0.0  ;;  %v283_v23 = vpop.permute.xlu1 %282  ;;  %v1129_v36 = vand.u32 4294901760, %v1128_v17  ;;  %v461_v25 = vadd.f32 %v388_v5, %v365_v43  ;;  %v547_v5 = vmul.f32 %v4104_v46, %v4097_v44  ;;  %v696_v43 = vld [vmem:[%s5405_s3 + $0x10] sm:$0xff] }
 0x13c   : > { %v4373_v45 = vand.u32 4294901760, %v681_v35  ;;  %3220 = vmatprep.subr.mxu1 %v1129_v36 }
 0x13d   : > { %3221 = vmatpush3.msra.mxu1 %v1129_v36 }
 0x13e   : > { %v4382_v3 = vsub.f32 %v681_v35, %v4373_v45  ;;  %3166 = vmatprep.subr.mxu0 %v4373_v45  ;;  %v695_v35 = vld [vmem:[%s5405_s3 + $0x8] sm:$0xff] }
 0x13f   : > { %v483_v49 = vpop.permute.xlu1 %482  ;;  %3167 = vmatpush3.msra.mxu0 %v4373_v45  ;;  %v4409_v33 = vand.u32 4294901760, %v695_v35 }
 0x140   : > { %v546_v17 = vmul.f32 %v4104_v46, %v483_v49  ;;  %v4397_v39 = vand.u32 4294901760, %v4382_v3  ;;  %v563_v49 = vadd.f32 %v547_v5, %v462_v55  ;;  %v364_v5 = vmul.f32 %v4106_v47, %v283_v23 }
 0x141   : > { %v4423_v55 = vsub.f32 %v695_v35, %v4409_v33 }
 0x142   : > { %5463 = vst [vmem:[#allocation15_spill] sm:$0xff] %v4397_v39  ;;  %v562_v36 = vadd.f32 %v546_v17, %v461_v25  ;;  %v1135_v62 = vsub.f32 %v4382_v3, %v4397_v39  ;;  %v697_v25 = vld [vmem:[%s5405_s3 + $0x18] sm:$0xff]  ;;  %v4415_v17 = vand.u32 4294901760, %v696_v43  ;;  %v460_v39 = vadd.f32 %v383_v21, %v364_v5  ;;  %v700_v21 = vld [vmem:[%s5405_s3 + $0x30] sm:$0xff] }
 0x143   : > { %v5420_v47 = vand.u32 4294901760, %v4423_v55  ;;  %v4483_v40 = vand.u32 4294901760, %v700_v21 }
 0x144   : > { %v663_v11 = vadd.f32 %v647_v27, %v562_v36  ;;  %v588_v18 = vpop.permute.xlu1 %587  ;;  %v1136_v54 = vand.u32 4294901760, %v1135_v62  ;;  %5464 = vst [vmem:[#allocation16_spill] sm:$0xff] %v4415_v17  ;;  %v698_v27 = vld [vmem:[%s5405_s3 + $0x20] sm:$0xff]  ;;  %v4425_v62 = vand.u32 4294901760, %v697_v25 }
 0x145   : > { %v648_v14 = vmul.f32 %v4109_v51, %v588_v18  ;;  %v4437_v1 = vand.u32 4294901760, %v698_v27 }
 0x146   : > { %v679_v28 = vmax.f32 %v663_v11, 0.0  ;;  %3222 = vmatprep.subr.mxu1 %v1136_v54  ;;  %5465 = vst [vmem:[#allocation17_spill] sm:$0xff] %v4425_v62  ;;  %v4444_v23 = vsub.f32 %v697_v25, %v4425_v62 }
 0x147   : > { %v664_v44 = vadd.f32 %v648_v14, %v563_v49  ;;  %3223 = vmatpush3.msra.mxu1 %v1136_v54  ;;  %v699_v49 = vld [vmem:[%s5405_s3 + $0x28] sm:$0xff]  ;;  %v4435_v14 = vsub.f32 %v696_v43, %v4415_v17 }
 0x148   : > { %v4420_v36 = vand.u32 4294901760, %v679_v28  ;;  %v5470_v19 = vand.u32 4294901760, %v4444_v23 }
 0x149   : > { %v680_v18 = vmax.f32 %v664_v44, 0.0  ;;  %v479_v11 = vpop.permute.xlu1 %478  ;;  %v4446_v44 = vand.u32 4294901760, %v699_v49 }
 0x14a   : > { %v4432_v54 = vsub.f32 %v679_v28, %v4420_v36  ;;  %v545_v59 = vmul.f32 %v4104_v46, %v479_v11  ;;  %v4458_v11 = vsub.f32 %v698_v27, %v4437_v1  ;;  %v900_v46 = vsub.f32 %v4423_v55, %v5420_v47 }
 0x14b   : > { %v4439_v35 = vand.u32 4294901760, %v680_v18  ;;  %v4474_v56 = vsub.f32 %v699_v49, %v4446_v44  ;;  %v5469_v47 = vand.u32 4294901760, %v4435_v14 }
 0x14c   : > { %v4453_v43 = vand.u32 4294901760, %v4432_v54  ;;  %5467 = vst [vmem:[#allocation19_spill] sm:$0xff] %v4458_v11  ;;  %v561_v25 = vadd.f32 %v545_v59, %v460_v39  ;;  %v5437_v49 = vand.u32 4294901760, %v4458_v11  ;;  %v901_v52 = vand.u32 4294901760, %v900_v46 }
 0x14d   : > { %v4449_v28 = vsub.f32 %v680_v18, %v4439_v35  ;;  %3168 = vmatprep.subr.mxu0 %v4439_v35  ;;  %v910_v27 = vsub.f32 %v4435_v14, %v5469_v47  ;;  %v920_v47 = vsub.f32 %v4444_v23, %v5470_v19 }
 0x14e   : > { %5466 = vst [vmem:[#allocation18_spill] sm:$0xff] %v4453_v43  ;;  %v580_v41 = vpop.permute.xlu1 %579  ;;  %3169 = vmatpush3.msra.mxu0 %v4439_v35  ;;  %v1149_v39 = vsub.f32 %v4432_v54, %v4453_v43  ;;  %v930_v46 = vsub.f32 %v4458_v11, %v5437_v49 }
 0x14f   : > { %v646_v5 = vmul.f32 %v4109_v51, %v580_v41  ;;  %3170 = vmatprep.subr.mxu0 %v4420_v36  ;;  %v4466_v18 = vand.u32 4294901760, %v4449_v28  ;;  %v701_v51 = vld [vmem:[%s5405_s3 + $0x38] sm:$0xff] }
 0x150   : > { %3171 = vmatpush3.msra.mxu0 %v4420_v36  ;;  %v4489_v4 = vand.u32 4294901760, %v701_v51  ;;  %v931_v11 = vand.u32 4294901760, %v930_v46 }
 0x151   : > { %5468 = vst [vmem:[#allocation20_spill] sm:$0xff] %v4466_v18  ;;  %v662_v59 = vadd.f32 %v646_v5, %v561_v25  ;;  %v1142_v41 = vsub.f32 %v4449_v28, %v4466_v18  ;;  %v702_v5 = vld [vmem:[%s5405_s3 + $0x40] sm:$0xff]  ;;  %v1150_v18 = vand.u32 4294901760, %v1149_v39  ;;  %v703_v25 = vld [vmem:[%s5405_s3 + $0x48] sm:$0xff] }
 0x152   : > { %v4514_v19 = vsub.f32 %v701_v51, %v4489_v4  ;;  %v4527_v51 = vand.u32 4294901760, %v703_v25 }
 0x153   : > { %v678_v57 = vmax.f32 %v662_v59, 0.0  ;;  %v1143_v38 = vand.u32 4294901760, %v1142_v41  ;;  %v4501_v59 = vsub.f32 %v700_v21, %v4483_v40  ;;  %v911_v41 = vand.u32 4294901760, %v910_v27 }
 0x154   : > { %v4516_v21 = vand.u32 4294901760, %v702_v5 }
 0x155   : > { %v4495_v43 = vand.u32 4294901760, %v678_v57  ;;  %3224 = vmatprep.subr.mxu1 %v1143_v38  ;;  %v5473_v46 = vand.u32 4294901760, %v4501_v59 }
 0x156   : > { %3225 = vmatpush3.msra.mxu1 %v1143_v38  ;;  %v5471_v38 = vand.u32 4294901760, %v4474_v56 }
 0x157   : > { %v4510_v0 = vsub.f32 %v678_v57, %v4495_v43  ;;  %3172 = vmatprep.subr.mxu0 %v4495_v43  ;;  %3226 = vmatprep.subr.mxu1 %v1150_v18  ;;  %v921_v57 = vand.u32 4294901760, %v920_v47  ;;  %v4549_v47 = vsub.f32 %v703_v25, %v4527_v51  ;;  %v706_v25 = vld [vmem:[%s5405_s3 + $0x60] sm:$0xff] }
 0x158   : > { %3173 = vmatpush3.msra.mxu0 %v4495_v43  ;;  %3227 = vmatpush3.msra.mxu1 %v1150_v18  ;;  %v940_v27 = vsub.f32 %v4474_v56, %v5471_v38  ;;  %v704_v18 = vld [vmem:[%s5405_s3 + $0x50] sm:$0xff]  ;;  %v4538_v38 = vsub.f32 %v702_v5, %v4516_v21 }
 0x159   : > { %3175 = vmatmul.mubr.f32.vlgmr.msra.gmra.mxu0 %v901_v52  ;;  %3254 = vmatprep.subr.mxu0 %v4128_v13  ;;  %v4524_v39 = vand.u32 4294901760, %v4510_v0  ;;  %v4551_v5 = vand.u32 4294901760, %v704_v18 }
 0x15a   : > { %3255 = vmatpush3.msra.mxu0 %v4128_v13  ;;  %3177 = vmatprep.mubr.f32.mxu0 %v911_v41  ;;  %v941_v49 = vand.u32 4294901760, %v940_v27  ;;  %v705_v13 = vld [vmem:[%s5405_s3 + $0x58] sm:$0xff] }
 0x15b   : > { %5472 = vst [vmem:[#allocation21_spill] sm:$0xff] %v4524_v39  ;;  %3256 = vmatprep.subr.mxu0 %v4145_v22  ;;  %v1156_v52 = vsub.f32 %v4510_v0, %v4524_v39  ;;  %v950_v39 = vsub.f32 %v4501_v59, %v5473_v46  ;;  %v4568_v46 = vsub.f32 %v704_v18, %v4551_v5 }
 0x15c   : > { %3257 = vmatpush3.msra.mxu0 %v4145_v22  ;;  %v5474_v22 = vand.u32 4294901760, %v4514_v19 }
 0x15d   : > { %3178 = vmatmul.mubr.f32.gmra.mxu0 %v921_v57  ;;  %3258 = vmatprep.subr.mxu0 %v4165_v37  ;;  %v1157_v41 = vand.u32 4294901760, %v1156_v52  ;;  %v5442_v57 = vand.u32 4294901760, %v4538_v38  ;;  %v4559_v52 = vand.u32 4294901760, %v705_v13 }
 0x15e   : > { %3259 = vmatpush3.msra.mxu0 %v4165_v37  ;;  %3180 = vmatprep.mubr.f32.mxu0 %v931_v11  ;;  %v960_v27 = vsub.f32 %v4514_v19, %v5474_v22  ;;  %v951_v37 = vand.u32 4294901760, %v950_v39  ;;  %v5443_v11 = vand.u32 4294901760, %v4549_v47  ;;  %v5448_v22 = vand.u32 4294901760, %v4568_v46 }
 0x15f   : > { %3228 = vmatprep.subr.mxu1 %v1157_v41  ;;  %3260 = vmatprep.subr.mxu0 %v4189_v60  ;;  %v970_v39 = vsub.f32 %v4538_v38, %v5442_v57  ;;  %v4581_v18 = vsub.f32 %v705_v13, %v4559_v52  ;;  %v708_v13 = vld [vmem:[%s5405_s3 + $0x70] sm:$0xff] }
 0x160   : > { %3229 = vmatpush3.msra.mxu1 %v1157_v41  ;;  %3261 = vmatpush3.msra.mxu0 %v4189_v60  ;;  %v707_v60 = vld [vmem:[%s5405_s3 + $0x68] sm:$0xff]  ;;  %v4583_v41 = vand.u32 4294901760, %v706_v25  ;;  %v4617_v57 = vand.u32 4294901760, %v708_v13 }
 0x161   : > { %3181 = vmatmul.mubr.f32.gmra.mxu0 %v941_v49  ;;  %3231 = vmatmul.mubr.f32.vlgmr.msra.gmra.mxu1 %v4409_v33  ;;  %v961_v49 = vand.u32 4294901760, %v960_v27  ;;  %v4592_v27 = vand.u32 4294901760, %v707_v60 }
 0x162   : > { %3262 = vmatprep.subr.mxu0 %v4212_v15  ;;  %3310 = vmatprep.subr.mxu1 %v4123_v6 }
 0x163   : > { %3263 = vmatpush3.msra.mxu0 %v4212_v15  ;;  %3311 = vmatpush3.msra.mxu1 %v4123_v6  ;;  %v980_v15 = vsub.f32 %v4549_v47, %v5443_v11  ;;  %v4602_v11 = vsub.f32 %v706_v25, %v4583_v41  ;;  %v4615_v25 = vsub.f32 %v707_v60, %v4592_v27 }
 0x164   : > { %3264 = vmatprep.subr.mxu0 %v4231_v48  ;;  %3312 = vmatprep.subr.mxu1 %v4133_v16 }
 0x165   : > { %3183 = vmatprep.mubr.f32.mxu0 %v951_v37  ;;  %3233 = vmatprep.mubr.f32.mxu1 %v4415_v17  ;;  %v971_v37 = vand.u32 4294901760, %v970_v39  ;;  %v990_v39 = vsub.f32 %v4568_v46, %v5448_v22  ;;  %v4633_v22 = vsub.f32 %v708_v13, %v4617_v57 }
 0x166   : > { %3265 = vmatpush3.msra.mxu0 %v4231_v48  ;;  %3313 = vmatpush3.msra.mxu1 %v4133_v16  ;;  %v709_v48 = vld [vmem:[%s5405_s3 + $0x78] sm:$0xff] }
 0x167   : > { %3184 = vmatmul.mubr.f32.gmra.mxu0 %v961_v49  ;;  %3234 = vmatmul.mubr.f32.gmra.mxu1 %v4425_v62  ;;  %v981_v49 = vand.u32 4294901760, %v980_v15  ;;  %v1009_v62 = vand.u32 4294901760, %v4602_v11  ;;  %v4626_v17 = vand.u32 4294901760, %v709_v48  ;;  %v991_v60 = vand.u32 4294901760, %v990_v39 }
 0x168   : > { %3266 = vmatprep.subr.mxu0 %v4244_v61  ;;  %3314 = vmatprep.subr.mxu1 %v4157_v30  ;;  %v1029_v13 = vand.u32 4294901760, %v4633_v22 }
 0x169   : > { %3267 = vmatpush3.msra.mxu0 %v4244_v61  ;;  %3315 = vmatpush3.msra.mxu1 %v4157_v30  ;;  %v5475_v61 = vand.u32 4294901760, %v4581_v18  ;;  %v4643_v39 = vsub.f32 %v709_v48, %v4626_v17 }
 0x16a   : > { %3268 = vmatprep.subr.mxu0 %v4262_v32  ;;  %3316 = vmatprep.subr.mxu1 %v4181_v58 }
 0x16b   : > { %3186 = vmatprep.mubr.f32.mxu0 %v971_v37  ;;  %3236 = vmatprep.mubr.f32.mxu1 %v4437_v1  ;;  %v1000_v15 = vsub.f32 %v4581_v18, %v5475_v61  ;;  %v1019_v37 = vand.u32 4294901760, %v4615_v25  ;;  %v1039_v61 = vand.u32 4294901760, %v4643_v39 }
 0x16c   : > { %3269 = vmatpush3.msra.mxu0 %v4262_v32  ;;  %3317 = vmatpush3.msra.mxu1 %v4181_v58 }
 0x16d   : > { %3187 = vmatmul.mubr.f32.gmra.mxu0 %v981_v49  ;;  %3237 = vmatmul.mubr.f32.gmra.mxu1 %v4446_v44  ;;  %v1001_v32 = vand.u32 4294901760, %v1000_v15  ;;  %v1010_v49 = vsub.f32 %v4602_v11, %v1009_v62 }
 0x16e   : > { %3270 = vmatprep.subr.mxu0 %v4275_v53  ;;  %3318 = vmatprep.subr.mxu1 %v4209_v10 }
 0x16f   : > { %3271 = vmatpush3.msra.mxu0 %v4275_v53  ;;  %3319 = vmatpush3.msra.mxu1 %v4209_v10  ;;  %v1020_v53 = vsub.f32 %v4615_v25, %v1019_v37  ;;  %v1011_v48 = vand.u32 4294901760, %v1010_v49 }
 0x170   : > { %3272 = vmatprep.subr.mxu0 %v4296_v29  ;;  %3320 = vmatprep.subr.mxu1 %v4228_v34 }
 0x171   : > { %3189 = vmatprep.mubr.f32.mxu0 %v991_v60  ;;  %3239 = vmatprep.mubr.f32.mxu1 %v4483_v40  ;;  %v1021_v15 = vand.u32 4294901760, %v1020_v53  ;;  %v1040_v60 = vsub.f32 %v4643_v39, %v1039_v61 }
 0x172   : > { %3273 = vmatpush3.msra.mxu0 %v4296_v29  ;;  %3321 = vmatpush3.msra.mxu1 %v4228_v34  ;;  %v1030_v29 = vsub.f32 %v4633_v22, %v1029_v13 }
 0x173   : > { %3190 = vmatmul.mubr.f32.gmra.mxu0 %v1001_v32  ;;  %3240 = vmatmul.mubr.f32.gmra.mxu1 %v4489_v4  ;;  %v1041_v32 = vand.u32 4294901760, %v1040_v60 }
 0x174   : > { %3274 = vmatprep.subr.mxu0 %v4320_v8  ;;  %3322 = vmatprep.subr.mxu1 %v4241_v12 }
 0x175   : > { %3275 = vmatpush3.msra.mxu0 %v4320_v8  ;;  %3323 = vmatpush3.msra.mxu1 %v4241_v12  ;;  %v1031_v8 = vand.u32 4294901760, %v1030_v29 }
 0x176   : > { %3276 = vmatprep.subr.mxu0 %v4356_v9  ;;  %3324 = vmatprep.subr.mxu1 %v4259_v31 }
 0x177   : > { %3192 = vmatprep.mubr.f32.mxu0 %v1011_v48  ;;  %3242 = vmatprep.mubr.f32.mxu1 %v4516_v21 }
 0x178   : > { %3277 = vmatpush3.msra.mxu0 %v4356_v9  ;;  %3325 = vmatpush3.msra.mxu1 %v4259_v31  ;;  %v5479_v9 = vand.u32 4294901760, %v4423_v55 }
 0x179   : > { %3193 = vmatmul.mubr.f32.gmra.mxu0 %v1021_v15  ;;  %3243 = vmatmul.mubr.f32.gmra.mxu1 %v4527_v51 }
 0x17a   : > { %3278 = vmatprep.subr.mxu0 %v4382_v3  ;;  %3326 = vmatprep.subr.mxu1 %v4272_v50 }
 0x17b   : > { %3279 = vmatpush3.msra.mxu0 %v4382_v3  ;;  %3327 = vmatpush3.msra.mxu1 %v4272_v50  ;;  %v5480_v3 = vld [vmem:[#allocation7_spill] sm:$0xff] }
 0x17c   : > { %3280 = vmatprep.subr.mxu0 %v4449_v28  ;;  %3328 = vmatprep.subr.mxu1 %v4293_v24 }
 0x17d   : > { %3195 = vmatprep.mubr.f32.mxu0 %v1031_v8  ;;  %3245 = vmatprep.mubr.f32.mxu1 %v4551_v5 }
 0x17e   : > { %3281 = vmatpush3.msra.mxu0 %v4449_v28  ;;  %3329 = vmatpush3.msra.mxu1 %v4293_v24  ;;  %v5492_v28 = vld [vmem:[#allocation13_spill] sm:$0xff] }
 0x17f   : > { %3196 = vmatmul.mubr.f32.gmra.mxu0 %v1041_v32  ;;  %3246 = vmatmul.mubr.f32.gmra.mxu1 %v4559_v52 }
 0x180   : > { %3282 = vmatprep.subr.mxu0 %v4432_v54  ;;  %3330 = vmatprep.subr.mxu1 %v4317_v7 }
 0x181   : > { %3283 = vmatpush3.msra.mxu0 %v4432_v54  ;;  %3331 = vmatpush3.msra.mxu1 %v4317_v7  ;;  %v5484_v54 = vld [vmem:[#allocation9_spill] sm:$0xff] }
 0x182   : > { %3284 = vmatprep.subr.mxu0 %v4510_v0  ;;  %3332 = vmatprep.subr.mxu1 %v4347_v63 }
 0x183   : > { %3248 = vmatprep.mubr.f32.mxu1 %v4583_v41  ;;  %3285 = vmatpush3.msra.mxu0 %v4510_v0  ;;  %v5477_v0 = vld [vmem:[#allocation19_spill] sm:$0xff] }
 0x184   : > { %3286 = vmatprep.mubr.f32.mxu0 %v4194_v2  ;;  %3333 = vmatpush3.msra.mxu1 %v4347_v63 }
 0x185   : > { %3249 = vmatmul.mubr.f32.gmra.mxu1 %v4592_v27  ;;  %3287 = vmatmul.mubr.f32.vlgmr.msra.gmra.mxu0 %v4423_v55  ;;  %v5483_v55 = vand.u32 4294901760, %v4444_v23 }
 0x186   : > { %3334 = vmatprep.subr.mxu1 %v4373_v45  ;;  %3366 = vmatprep.subr.mxu0 %v4140_v20 }
 0x187   : > { %3335 = vmatpush3.msra.mxu1 %v4373_v45  ;;  %3367 = vmatpush3.msra.mxu0 %v4140_v20  ;;  %v5476_v20 = vld [vmem:[#allocation6_spill] sm:$0xff] }
 0x188   : > { %3336 = vmatprep.subr.mxu1 %v4439_v35  ;;  %3368 = vmatprep.subr.mxu0 %v4153_v26 }
 0x189   : > { %3251 = vmatprep.mubr.f32.mxu1 %v4617_v57  ;;  %3289 = vmatprep.mubr.f32.mxu0 %v4435_v14 }
 0x18a   : > { %3337 = vmatpush3.msra.mxu1 %v4439_v35  ;;  %3369 = vmatpush3.msra.mxu0 %v4153_v26  ;;  %v5478_v26 = vand.u32 4294901760, %v4194_v2  ;;  %v5482_v2 = vand.u32 4294901760, %v4435_v14  ;;  %v5487_v14 = vand.u32 4294901760, %v4474_v56 }
 0x18b   : > { %3252 = vmatmul.mubr.f32.gmra.mxu1 %v4626_v17  ;;  %3290 = vmatmul.mubr.f32.gmra.mxu0 %v4444_v23  ;;  %v5488_v23 = vld [vmem:[#allocation11_spill] sm:$0xff] }
 0x18c   : > { %3338 = vmatprep.subr.mxu1 %v4420_v36  ;;  %3370 = vmatprep.subr.mxu0 %v4171_v42 }
 0x18d   : > { %3339 = vmatpush3.msra.mxu1 %v4420_v36  ;;  %3371 = vmatpush3.msra.mxu0 %v4171_v42  ;;  %v5481_v42 = vld [vmem:[#allocation8_spill] sm:$0xff] }
 0x18e   : > { %3340 = vmatprep.subr.mxu1 %v4495_v43  ;;  %3372 = vmatprep.subr.mxu0 %v5476_v20 }
 0x18f   : > { %3292 = vmatprep.mubr.f32.mxu0 %v5477_v0  ;;  %3341 = vmatpush3.msra.mxu1 %v4495_v43 }
 0x190   : > { %3342 = vmatprep.mubr.f32.mxu1 %v5478_v26  ;;  %3373 = vmatpush3.msra.mxu0 %v5476_v20 }
 0x191   : > { %3293 = vmatmul.mubr.f32.gmra.mxu0 %v4474_v56  ;;  %3343 = vmatmul.mubr.f32.vlgmr.msra.gmra.mxu1 %v5479_v9  ;;  %v5491_v56 = vand.u32 4294901760, %v4514_v19 }
 0x192   : > { %3374 = vmatprep.subr.mxu0 %v5480_v3  ;;  %3422 = vmatprep.subr.mxu1 %v4123_v6 }
 0x193   : > { %3375 = vmatpush3.msra.mxu0 %v5480_v3  ;;  %3423 = vmatpush3.msra.mxu1 %v4123_v6  ;;  %v5485_v6 = vld [vmem:[#allocation10_spill] sm:$0xff] }
 0x194   : > { %3376 = vmatprep.subr.mxu0 %v5481_v42  ;;  %3424 = vmatprep.subr.mxu1 %v4133_v16 }
 0x195   : > { %3295 = vmatprep.mubr.f32.mxu0 %v4501_v59  ;;  %3345 = vmatprep.mubr.f32.mxu1 %v5482_v2 }
 0x196   : > { %3377 = vmatpush3.msra.mxu0 %v5481_v42  ;;  %3425 = vmatpush3.msra.mxu1 %v4133_v16  ;;  %v5486_v16 = vand.u32 4294901760, %v5477_v0 }
 0x197   : > { %3296 = vmatmul.mubr.f32.gmra.mxu0 %v4514_v19  ;;  %3346 = vmatmul.mubr.f32.gmra.mxu1 %v5483_v55  ;;  %v5496_v19 = vld [vmem:[#allocation15_spill] sm:$0xff] }
 0x198   : > { %3378 = vmatprep.subr.mxu0 %v5484_v54  ;;  %3426 = vmatprep.subr.mxu1 %v4157_v30 }
 0x199   : > { %3379 = vmatpush3.msra.mxu0 %v5484_v54  ;;  %3427 = vmatpush3.msra.mxu1 %v4157_v30  ;;  %v5489_v30 = vld [vmem:[#allocation12_spill] sm:$0xff] }
 0x19a   : > { %3380 = vmatprep.subr.mxu0 %v5485_v6  ;;  %3428 = vmatprep.subr.mxu1 %v4181_v58 }
 0x19b   : > { %3298 = vmatprep.mubr.f32.mxu0 %v4538_v38  ;;  %3348 = vmatprep.mubr.f32.mxu1 %v5486_v16 }
 0x19c   : > { %3381 = vmatpush3.msra.mxu0 %v5485_v6  ;;  %3429 = vmatpush3.msra.mxu1 %v4181_v58  ;;  %v5490_v58 = vand.u32 4294901760, %v4501_v59  ;;  %v5495_v59 = vand.u32 4294901760, %v4549_v47 }
 0x19d   : > { %3299 = vmatmul.mubr.f32.gmra.mxu0 %v4549_v47  ;;  %3349 = vmatmul.mubr.f32.gmra.mxu1 %v5487_v14  ;;  %v5499_v47 = vand.u32 4294901760, %v4581_v18 }
 0x19e   : > { %3382 = vmatprep.subr.mxu0 %v5488_v23  ;;  %3430 = vmatprep.subr.mxu1 %v4209_v10 }
 0x19f   : > { %3383 = vmatpush3.msra.mxu0 %v5488_v23  ;;  %3431 = vmatpush3.msra.mxu1 %v4209_v10  ;;  %v5493_v10 = vld [vmem:[#allocation14_spill] sm:$0xff] }
 0x1a0   : > { %3384 = vmatprep.subr.mxu0 %v5489_v30  ;;  %3432 = vmatprep.subr.mxu1 %v4228_v34 }
 0x1a1   : > { %3301 = vmatprep.mubr.f32.mxu0 %v4568_v46  ;;  %3351 = vmatprep.mubr.f32.mxu1 %v5490_v58 }
 0x1a2   : > { %3385 = vmatpush3.msra.mxu0 %v5489_v30  ;;  %3433 = vmatpush3.msra.mxu1 %v4228_v34  ;;  %v5494_v34 = vand.u32 4294901760, %v4538_v38  ;;  %v5500_v38 = vld [vmem:[#allocation18_spill] sm:$0xff] }
 0x1a3   : > { %3302 = vmatmul.mubr.f32.gmra.mxu0 %v4581_v18  ;;  %3352 = vmatmul.mubr.f32.gmra.mxu1 %v5491_v56 }
 0x1a4   : > { %3386 = vmatprep.subr.mxu0 %v5492_v28  ;;  %3434 = vmatprep.subr.mxu1 %v4241_v12 }
 0x1a5   : > { %3387 = vmatpush3.msra.mxu0 %v5492_v28  ;;  %3435 = vmatpush3.msra.mxu1 %v4241_v12  ;;  %v5497_v12 = vld [vmem:[#allocation20_spill] sm:$0xff] }
 0x1a6   : > { %3388 = vmatprep.subr.mxu0 %v5493_v10  ;;  %3436 = vmatprep.subr.mxu1 %v4259_v31 }
 0x1a7   : > { %3304 = vmatprep.mubr.f32.mxu0 %v4602_v11  ;;  %3354 = vmatprep.mubr.f32.mxu1 %v5494_v34 }
 0x1a8   : > { %3389 = vmatpush3.msra.mxu0 %v5493_v10  ;;  %3437 = vmatpush3.msra.mxu1 %v4259_v31  ;;  %v5498_v31 = vand.u32 4294901760, %v4568_v46 }
 0x1a9   : > { %3305 = vmatmul.mubr.f32.gmra.mxu0 %v4615_v25  ;;  %3355 = vmatmul.mubr.f32.gmra.mxu1 %v5495_v59 }
 0x1aa   : > { %3390 = vmatprep.subr.mxu0 %v5496_v19  ;;  %3438 = vmatprep.subr.mxu1 %v4272_v50 }
 0x1ab   : > { %3391 = vmatpush3.msra.mxu0 %v5496_v19  ;;  %3439 = vmatpush3.msra.mxu1 %v4272_v50  ;;  %v5501_v50 = vld [vmem:[#allocation21_spill] sm:$0xff] }
 0x1ac   : > { %3392 = vmatprep.subr.mxu0 %v5497_v12  ;;  %3440 = vmatprep.subr.mxu1 %v4293_v24 }
 0x1ad   : > { %3307 = vmatprep.mubr.f32.mxu0 %v4633_v22  ;;  %3357 = vmatprep.mubr.f32.mxu1 %v5498_v31 }
 0x1ae   : > { %3393 = vmatpush3.msra.mxu0 %v5497_v12  ;;  %3441 = vmatpush3.msra.mxu1 %v4293_v24  ;;  %v5502_v24 = vld [vmem:[#allocation5_spill] sm:$0xff] }
 0x1af   : > { %3308 = vmatmul.mubr.f32.gmra.mxu0 %v4643_v39  ;;  %3358 = vmatmul.mubr.f32.gmra.mxu1 %v5499_v47 }
 0x1b0   : > { %3394 = vmatprep.subr.mxu0 %v5500_v38  ;;  %3442 = vmatprep.subr.mxu1 %v4317_v7 }
 0x1b1   : > { %3395 = vmatpush3.msra.mxu0 %v5500_v38  ;;  %3443 = vmatpush3.msra.mxu1 %v4317_v7  ;;  %v5503_v7 = vld [vmem:[#allocation16_spill] sm:$0xff] }
 0x1b2   : > { %3396 = vmatprep.subr.mxu0 %v5501_v50  ;;  %3444 = vmatprep.subr.mxu1 %v4347_v63 }
 0x1b3   : > { %3360 = vmatprep.mubr.f32.mxu1 %v1009_v62  ;;  %3397 = vmatpush3.msra.mxu0 %v5501_v50  ;;  %v5504_v62 = vld [vmem:[#allocation17_spill] sm:$0xff] }
 0x1b4   : > { %3398 = vmatprep.mubr.f32.mxu0 %v5502_v24  ;;  %3445 = vmatpush3.msra.mxu1 %v4347_v63 }
 0x1b5   : > { %3361 = vmatmul.mubr.f32.gmra.mxu1 %v1019_v37  ;;  %3399 = vmatmul.mubr.f32.vlgmr.msra.gmra.mxu0 %v4409_v33  ;;  %v5449_v37 = vmov 0.0  }
 0x1b6   : > { %3446 = vmatprep.subr.mxu1 %v4373_v45  ;;  %3363 = vmatprep.mubr.f32.mxu1 %v1029_v13 }
 0x1b7   : > { %3447 = vmatpush3.msra.mxu1 %v4373_v45  ;;  %3401 = vmatprep.mubr.f32.mxu0 %v5503_v7 }
 0x1b8   : > { %3448 = vmatprep.subr.mxu1 %v4439_v35  ;;  %3478 = vmatprep.subr.mxu0 %v5449_v37 }
 0x1b9   : > { %3449 = vmatpush3.msra.mxu1 %v4439_v35  ;;  %3402 = vmatmul.mubr.f32.gmra.mxu0 %v5504_v62 }
 0x1ba   : > { %3364 = vmatmul.mubr.f32.gmra.mxu1 %v1039_v61  ;;  %3450 = vmatprep.subr.mxu1 %v4420_v36 }
 0x1bb   : > { %3451 = vmatpush3.msra.mxu1 %v4420_v36  ;;  %3404 = vmatprep.mubr.f32.mxu0 %v4437_v1 }
 0x1bc   : > { %3452 = vmatprep.subr.mxu1 %v4495_v43  ;;  %3454 = vmatprep.mubr.f32.mxu1 %v5502_v24 }
 0x1bd   : > { %3453 = vmatpush3.msra.mxu1 %v4495_v43  ;;  %3405 = vmatmul.mubr.f32.gmra.mxu0 %v4446_v44 }
 0x1be   : > { %3455 = vmatmul.mubr.f32.vlgmr.msra.gmra.mxu1 %v4409_v33  ;;  %3407 = vmatprep.mubr.f32.mxu0 %v4483_v40 }
 0x1bf   : > { %3457 = vmatprep.mubr.f32.mxu1 %v5503_v7  ;;  %3513 = vmatprep.subr.mxu1 %v5449_v37 }
 0x1c1   : > { %3408 = vmatmul.mubr.f32.gmra.mxu0 %v4489_v4 }
 0x1c2   : > { %3458 = vmatmul.mubr.f32.gmra.mxu1 %v5504_v62  ;;  %3410 = vmatprep.mubr.f32.mxu0 %v4516_v21 }
 0x1c3   : > { %3460 = vmatprep.mubr.f32.mxu1 %v4437_v1  ;;  %v4846_v1 = vpop.permute.xlu1 %803 }
 0x1c5   : > { %3411 = vmatmul.mubr.f32.gmra.mxu0 %v4527_v51 }
 0x1c6   : > { %3461 = vmatmul.mubr.f32.gmra.mxu1 %v4446_v44  ;;  %3413 = vmatprep.mubr.f32.mxu0 %v4551_v5 }
 0x1c7   : > { %3463 = vmatprep.mubr.f32.mxu1 %v4483_v40  ;;  %v4850_v40 = vpop.permute.xlu0 %798 }
 0x1c9   : > { %3414 = vmatmul.mubr.f32.gmra.mxu0 %v4559_v52 }
 0x1ca   : > { %3464 = vmatmul.mubr.f32.gmra.mxu1 %v4489_v4  ;;  %3416 = vmatprep.mubr.f32.mxu0 %v4583_v41  ;;  %v4848_v4 = vpop.permute.xlu1 %793 }
 0x1cb   : > { %3466 = vmatprep.mubr.f32.mxu1 %v4516_v21  ;;  %v784_v45 = vpop.permute.xlu0 %783 }
 0x1cd   : > { %3417 = vmatmul.mubr.f32.gmra.mxu0 %v4592_v27 }
 0x1ce   : > { %3467 = vmatmul.mubr.f32.gmra.mxu1 %v4527_v51  ;;  %3419 = vmatprep.mubr.f32.mxu0 %v4617_v57  ;;  %v4852_v63 = vpop.permute.xlu1 %788 }
 0x1cf   : > { %3469 = vmatprep.mubr.f32.mxu1 %v4551_v5  ;;  %v774_v36 = vpop.permute.xlu0 %773 }
 0x1d1   : > { %3420 = vmatmul.mubr.f32.gmra.mxu0 %v4626_v17 }
 0x1d2   : > { %3470 = vmatmul.mubr.f32.gmra.mxu1 %v4559_v52  ;;  %v779_v33 = vpop.permute.xlu1 %778  ;;  %3510 = vmatprep.mubr.msk.f32.mxu0 %vm3844_vm0, %v5449_v37 }
 0x1d3   : > { %3472 = vmatprep.mubr.f32.mxu1 %v4583_v41  ;;  %v764_v44 = vpop.permute.xlu0 %763 }
 0x1d6   : > { %3473 = vmatmul.mubr.f32.gmra.mxu1 %v4592_v27  ;;  %v769_v35 = vpop.permute.xlu1 %768 }
 0x1d7   : > { %3475 = vmatprep.mubr.f32.mxu1 %v4617_v57  ;;  %v754_v21 = vpop.permute.xlu0 %753 }
 0x1da   : > { %3476 = vmatmul.mubr.f32.gmra.mxu1 %v4626_v17  ;;  %v759_v43 = vpop.permute.xlu1 %758 }
 0x1db   : > { %v744_v5 = vpop.permute.xlu0 %743  ;;  %3545 = vmatprep.mubr.msk.f32.mxu1 %vm3844_vm0, %v5449_v37 }
 0x1de   : > { %v749_v51 = vpop.permute.xlu1 %748 }
 0x1df   : > { %v734_v11 = vpop.permute.xlu0 %733 }
 0x1e2   : > { %v739_v52 = vpop.permute.xlu1 %738 }
 0x1e6   : > { %v729_v22 = vpop.permute.xlu1 %728 }
 0x219   : > { %v3176_v57 = vpop.f32.mrf.mxu0 }
 0x21a   : > { %v904_v18 = vadd.f32 %v3176_v57, %v734_v11 }
 0x21b   : > { %v893_v17 = vpop.f32.mrf.mxu0 }
 0x21c   : > { %v894_v49 = vadd.f32 %v893_v17, %v729_v22 }
 0x21d   : > { %v3179_v46 = vpop.f32.mrf.mxu0 }
 0x21e   : > { %v924_v48 = vadd.f32 %v3179_v46, %v744_v5 }
 0x21f   : > { %v913_v41 = vpop.f32.mrf.mxu0 }
 0x220   : > { %v914_v60 = vadd.f32 %v913_v41, %v739_v52 }
 0x221   : > { %v3182_v27 = vpop.f32.mrf.mxu0  ;;  %v3232_v25 = vpop.f32.mrf.mxu1 }
 0x222   : > { %v1201_v39 = vadd.f32 %v3232_v25, %v904_v18  ;;  %v944_v0 = vadd.f32 %v3182_v27, %v754_v21 }
 0x223   : > { %v933_v53 = vpop.f32.mrf.mxu0  ;;  %v1194_v13 = vpop.f32.mrf.mxu1 }
 0x224   : > { %v1195_v61 = vadd.f32 %v1194_v13, %v894_v49  ;;  %v934_v42 = vadd.f32 %v933_v53, %v749_v51 }
 0x227   : > { %v3185_v15 = vpop.f32.mrf.mxu0  ;;  %v3235_v29 = vpop.f32.mrf.mxu1 }
 0x228   : > { %v1213_v8 = vadd.f32 %v3235_v29, %v924_v48  ;;  %v964_v6 = vadd.f32 %v3185_v15, %v764_v44 }
 0x229   : > { %v953_v32 = vpop.f32.mrf.mxu0  ;;  %v1206_v20 = vpop.f32.mrf.mxu1 }
 0x22a   : > { %v1207_v26 = vadd.f32 %v1206_v20, %v914_v60  ;;  %v954_v30 = vadd.f32 %v953_v32, %v759_v43 }
 0x22d   : > { %v3188_v9 = vpop.f32.mrf.mxu0  ;;  %v3238_v3 = vpop.f32.mrf.mxu1 }
 0x22e   : > { %v1225_v2 = vadd.f32 %v3238_v3, %v944_v0  ;;  %v984_v10 = vadd.f32 %v3188_v9, %v774_v36 }
 0x22f   : > { %v973_v55 = vpop.f32.mrf.mxu0  ;;  %v1218_v54 = vpop.f32.mrf.mxu1 }
 0x230   : > { %v1219_v16 = vadd.f32 %v1218_v54, %v934_v42  ;;  %v974_v12 = vadd.f32 %v973_v55, %v769_v35 }
 0x233   : > { %v3191_v14 = vpop.f32.mrf.mxu0  ;;  %v3241_v23 = vpop.f32.mrf.mxu1 }
 0x234   : > { %v4856_v58 = vadd.f32 %v3241_v23, %v964_v6  ;;  %v1004_v50 = vadd.f32 %v3191_v14, %v784_v45 }
 0x235   : > { %v993_v56 = vpop.f32.mrf.mxu0  ;;  %v1230_v28 = vpop.f32.mrf.mxu1 }
 0x236   : > { %v4858_v34 = vadd.f32 %v1230_v28, %v954_v30  ;;  %v994_v44 = vadd.f32 %v993_v56, %v779_v33 }
 0x239   : > { %v3194_v59 = vpop.f32.mrf.mxu0  ;;  %v3244_v19 = vpop.f32.mrf.mxu1 }
 0x23a   : > { %v4860_v31 = vadd.f32 %v3244_v19, %v984_v10  ;;  %v1024_v45 = vadd.f32 %v3194_v59, %v4848_v4 }
 0x23b   : > { %v1013_v47 = vpop.f32.mrf.mxu0  ;;  %v1242_v38 = vpop.f32.mrf.mxu1 }
 0x23c   : > { %v4862_v24 = vadd.f32 %v1242_v38, %v974_v12  ;;  %v1014_v33 = vadd.f32 %v1013_v47, %v4852_v63 }
 0x23f   : > { %v4864_v7 = vpop.f32.mrf.mxu0  ;;  %v3247_v62 = vpop.f32.mrf.mxu1 }
 0x240   : > { %v4866_v43 = vadd.f32 %v3247_v62, %v1004_v50 }
 0x241   : > { %v4872_v36 = vpop.f32.mrf.mxu0  ;;  %v1254_v35 = vpop.f32.mrf.mxu1 }
 0x242   : > { %v4875_v21 = vadd.f32 %v1254_v35, %v994_v44 }
 0x245   : > { %v3250_v51 = vpop.f32.mrf.mxu1  ;;  %v3288_v5 = vpop.f32.mrf.mxu0 }
 0x246   : > { %v4878_v57 = vadd.f32 %v3250_v51, %v1024_v45  ;;  %v1396_v52 = vadd.f32 %v3288_v5, %v1201_v39 }
 0x247   : > { %v1266_v17 = vpop.f32.mrf.mxu1  ;;  %v1388_v11 = vpop.f32.mrf.mxu0 }
 0x248   : > { %v4880_v46 = vadd.f32 %v1266_v17, %v1014_v33  ;;  %v1389_v18 = vadd.f32 %v1388_v11, %v1195_v61 }
 0x24b   : > { %v4882_v41 = vpop.f32.mrf.mxu1  ;;  %v3291_v22 = vpop.f32.mrf.mxu0 }
 0x24c   : > { %v1410_v27 = vadd.f32 %v3291_v22, %v1213_v8 }
 0x24d   : > { %v4884_v25 = vpop.f32.mrf.mxu1  ;;  %v1402_v4 = vpop.f32.mrf.mxu0 }
 0x24e   : > { %v1403_v49 = vadd.f32 %v1402_v4, %v1207_v26 }
 0x251   : > { %v3294_v53 = vpop.f32.mrf.mxu0  ;;  %v3344_v13 = vpop.f32.mrf.mxu1 }
 0x252   : > { %v1424_v48 = vadd.f32 %v3294_v53, %v1225_v2  ;;  %v4886_v63 = vadd.f32 %v3344_v13, %v1396_v52 }
 0x253   : > { %v1416_v15 = vpop.f32.mrf.mxu0  ;;  %v1582_v39 = vpop.f32.mrf.mxu1 }
 0x254   : > { %5505 = vst [vmem:[#allocation6_spill] sm:$0xff] %v4886_v63  ;;  %v1417_v29 = vadd.f32 %v1416_v15, %v1219_v16  ;;  %v4888_v60 = vadd.f32 %v1582_v39, %v1389_v18 }
 0x256   : > { %5506 = vst [vmem:[#allocation19_spill] sm:$0xff] %v4888_v60  ;;  %v1034_v60 = vadd.f32 %v4872_v36, %v4850_v40 }
 0x257   : > { %v4890_v32 = vpop.f32.mrf.mxu0  ;;  %v3347_v61 = vpop.f32.mrf.mxu1 }
 0x258   : > { %v4892_v20 = vadd.f32 %v3347_v61, %v1410_v27 }
 0x259   : > { %v4894_v8 = vpop.f32.mrf.mxu0  ;;  %v1598_v0 = vpop.f32.mrf.mxu1 }
 0x25a   : > { %v4896_v9 = vadd.f32 %v1598_v0, %v1403_v49 }
 0x25d   : > { %v3300_v26 = vpop.f32.mrf.mxu0  ;;  %v3350_v3 = vpop.f32.mrf.mxu1 }
 0x25e   : > { %v4898_v42 = vadd.f32 %v3350_v3, %v1424_v48  ;;  %v1044_v3 = vadd.f32 %v4864_v7, %v4846_v1  ;;  %v1279_v7 = vadd.f32 %v4884_v25, %v1034_v60 }
 0x25f   : > { %v4900_v2 = vpop.f32.mrf.mxu0  ;;  %v1614_v55 = vpop.f32.mrf.mxu1 }
 0x260   : > { %v4902_v54 = vadd.f32 %v1614_v55, %v1417_v29 }
 0x263   : > { %v3303_v6 = vpop.f32.mrf.mxu0  ;;  %v4904_v16 = vpop.f32.mrf.mxu1 }
 0x265   : > { %v1458_v14 = vpop.f32.mrf.mxu0  ;;  %v4906_v23 = vpop.f32.mrf.mxu1 }
 0x266   : > { %v1459_v63 = vadd.f32 %v1458_v14, %v4875_v21  ;;  %v1445_v21 = vadd.f32 %v4900_v2, %v4862_v24 }
 0x269   : > { %v3306_v30 = vpop.f32.mrf.mxu0  ;;  %v3356_v56 = vpop.f32.mrf.mxu1 }
 0x26b   : > { %v1472_v28 = vpop.f32.mrf.mxu0  ;;  %v4908_v10 = vpop.f32.mrf.mxu1 }
 0x26f   : > { %v3309_v59 = vpop.f32.mrf.mxu0  ;;  %v3359_v19 = vpop.f32.mrf.mxu1 }
 0x271   : > { %v1486_v12 = vpop.f32.mrf.mxu0  ;;  %v1662_v47 = vpop.f32.mrf.mxu1 }
 0x272   : > { %v1663_v40 = vadd.f32 %v1662_v47, %v1459_v63  ;;  %v1487_v14 = vadd.f32 %v1486_v12, %v1279_v7  ;;  %v1647_v63 = vadd.f32 %v4908_v10, %v1445_v21 }
 0x275   : > { %v3362_v38 = vpop.f32.mrf.mxu1  ;;  %v4910_v50 = vpop.f32.mrf.mxu0 }
 0x276   : > { %5507 = vst [vmem:[#allocation7_spill] sm:$0xff] %v4910_v50 }
 0x277   : > { %v1678_v62 = vpop.f32.mrf.mxu1  ;;  %v4912_v44 = vpop.f32.mrf.mxu0 }
 0x278   : > { %5508 = vst [vmem:[#allocation8_spill] sm:$0xff] %v4912_v44  ;;  %v1480_v44 = vadd.f32 %v3306_v30, %v4878_v57  ;;  %v1452_v57 = vadd.f32 %v3300_v26, %v4860_v31  ;;  %v1431_v31 = vadd.f32 %v4894_v8, %v4858_v34 }
 0x279   : > { %v4914_v35 = vpop.f32.mrf.mxu0 }
 0x27a   : > { %v3365_v45 = vpop.f32.mrf.mxu1  ;;  %v1631_v8 = vadd.f32 %v4906_v23, %v1431_v31 }
 0x27b   : > { %v4916_v51 = vpop.f32.mrf.mxu0 }
 0x27c   : > { %5509 = vst [vmem:[#allocation9_spill] sm:$0xff] %v4916_v51  ;;  %v1694_v5 = vpop.f32.mrf.mxu1  ;;  %v1687_v51 = vadd.f32 %v3362_v38, %v1480_v44 }
 0x27d   : > { %v4918_v33 = vpop.f32.mrf.mxu0 }
 0x27e   : > { %v4920_v52 = vpop.f32.mrf.mxu1  ;;  %v1852_v7 = vadd.f32 %v4918_v33, %v4898_v42 }
 0x27f   : > { %5510 = vst [vmem:[#allocation10_spill] sm:$0xff] %v4920_v52  ;;  %v4922_v17 = vpop.f32.mrf.mxu0  ;;  %v1466_v52 = vadd.f32 %v3303_v6, %v4866_v43  ;;  %v1438_v43 = vadd.f32 %v4890_v32, %v4856_v58  ;;  %v1695_v32 = vadd.f32 %v1694_v5, %v1487_v14 }
 0x280   : > { %v4924_v11 = vpop.f32.mrf.mxu1 }
 0x281   : > { %5511 = vst [vmem:[#allocation11_spill] sm:$0xff] %v4924_v11  ;;  %v4926_v18 = vpop.f32.mrf.mxu0 }
 0x282   : > { %v4928_v22 = vpop.f32.mrf.mxu1 }
 0x283   : > { %5512 = vst [vmem:[#allocation12_spill] sm:$0xff] %v4928_v22  ;;  %v4930_v27 = vpop.f32.mrf.mxu0  ;;  %v1473_v22 = vadd.f32 %v1472_v28, %v4880_v46  ;;  %v1655_v46 = vadd.f32 %v3356_v56, %v1452_v57  ;;  %v1639_v56 = vadd.f32 %v4904_v16, %v1438_v43 }
 0x284   : > { %v4932_v4 = vpop.f32.mrf.mxu1 }
 0x285   : > { %5513 = vst [vmem:[#allocation13_spill] sm:$0xff] %v4932_v4  ;;  %v3412_v49 = vpop.f32.mrf.mxu0  ;;  %v1285_v4 = vadd.f32 %v4882_v41, %v1044_v3  ;;  %v1679_v36 = vadd.f32 %v1678_v62, %v1473_v22  ;;  %v1864_v10 = vadd.f32 %v4926_v18, %v1639_v56  ;;  %v1840_v18 = vadd.f32 %v4914_v35, %v4892_v20 }
 0x286   : > { %v4934_v53 = vpop.f32.mrf.mxu1  ;;  %v1876_v26 = vadd.f32 %v3412_v49, %v1655_v46  ;;  %v1846_v20 = vadd.f32 %v4922_v17, %v4902_v54  ;;  %v5516_v54 = vld [vmem:[#allocation9_spill] sm:$0xff] }
 0x287   : > { %v1869_v13 = vpop.f32.mrf.mxu0  ;;  %v1494_v6 = vadd.f32 %v3309_v59, %v1285_v4  ;;  %v4999_v42 = vadd.f32 %v4934_v53, %v1852_v7  ;;  %v1834_v17 = vadd.f32 %v5516_v54, %v4896_v9 }
 0x288   : > { %v4936_v48 = vpop.f32.mrf.mxu1  ;;  %v1870_v12 = vadd.f32 %v1869_v13, %v1647_v63  ;;  %v1858_v13 = vadd.f32 %v4930_v27, %v1631_v8  ;;  %v5522_v8 = vld [vmem:[#allocation19_spill] sm:$0xff] }
 0x289   : > { %5514 = vst [vmem:[#allocation14_spill] sm:$0xff] %v4936_v48  ;;  %v3415_v15 = vpop.f32.mrf.mxu0  ;;  %v1671_v48 = vadd.f32 %v3359_v19, %v1466_v52  ;;  %v1703_v28 = vadd.f32 %v3365_v45, %v1494_v6 }
 0x28a   : > { %v4938_v39 = vpop.f32.mrf.mxu1 }
 0x28b   : > { %v1881_v29 = vpop.f32.mrf.mxu0  ;;  %v1888_v41 = vadd.f32 %v3415_v15, %v1671_v48 }
 0x28c   : > { %v4940_v61 = vpop.f32.mrf.mxu1  ;;  %v1882_v38 = vadd.f32 %v1881_v29, %v1663_v40  ;;  %v4969_v29 = vadd.f32 %v4938_v39, %v1864_v10  ;;  %v5523_v10 = vld [vmem:[#allocation8_spill] sm:$0xff] }
 0x28d   : > { %v3418_v0 = vpop.f32.mrf.mxu0  ;;  %v4983_v27 = vadd.f32 %v4940_v61, %v1858_v13  ;;  %v5515_v61 = vmov 0.0  }
 0x28e   : > { %v3468_v55 = vpop.f32.mrf.mxu1  ;;  %v1900_v3 = vadd.f32 %v3418_v0, %v1687_v51  ;;  %v2099_v35 = vmax.f32 %v4969_v29, 0.0 }
 0x28f   : > { %v1893_v37 = vpop.f32.mrf.mxu0  ;;  %v2053_v45 = vadd.f32 %v3468_v55, %v1876_v26  ;;  %v2098_v46 = vmax.f32 %v4983_v27, 0.0 }
 0x290   : > { %v2046_v11 = vpop.f32.mrf.mxu1  ;;  %v1894_v25 = vadd.f32 %v1893_v37, %v1679_v36  ;;  %v5517_v53 = vld [vmem:[#allocation14_spill] sm:$0xff] }
 0x291   : > { %v3421_v1 = vpop.f32.mrf.mxu0  ;;  %v2047_v5 = vadd.f32 %v2046_v11, %v1870_v12  ;;  %v2101_v0 = vmax.f32 %v2053_v45, 0.0  ;;  %v5017_v21 = vadd.f32 %v5517_v53, %v1846_v20  ;;  %v5056_v45 = vand.u32 4294901760, %v2098_v46 }
 0x292   : > { %v3471_v50 = vpop.f32.mrf.mxu1  ;;  %v1912_v47 = vadd.f32 %v3421_v1, %v1703_v28 }
 0x293   : > { %v2065_v60 = vadd.f32 %v3471_v50, %v1888_v41  ;;  %v1905_v44 = vpop.f32.mrf.mxu0  ;;  %v2100_v39 = vmax.f32 %v2047_v5, 0.0  ;;  %v5002_v33 = vand.u32 4294901760, %v2101_v0  ;;  %v2096_v12 = vmax.f32 %v5017_v21, 0.0 }
 0x294   : > { %v2058_v30 = vpop.f32.mrf.mxu1  ;;  %v1906_v37 = vadd.f32 %v1905_v44, %v1695_v32  ;;  %v2097_v44 = vmax.f32 %v4999_v42, 0.0  ;;  %v1822_v5 = vadd.f32 %v5523_v10, %v5522_v8  ;;  %v5099_v42 = vsub.f32 %v2098_v46, %v5056_v45 }
 0x295   : > { %v2059_v62 = vadd.f32 %v2058_v30, %v1882_v38  ;;  %v2103_v51 = vmax.f32 %v2065_v60, 0.0  ;;  %v5020_v14 = vand.u32 4294901760, %v2100_v39  ;;  %v5039_v31 = vsub.f32 %v2101_v0, %v5002_v33 }
 0x296   : > { %v3474_v19 = vpop.f32.mrf.mxu1 }
 0x297   : > { %v2077_v58 = vadd.f32 %v3474_v19, %v1900_v3  ;;  %v2102_v49 = vmax.f32 %v2059_v62, 0.0  ;;  %v4971_v55 = vand.u32 4294901760, %v2103_v51  ;;  %v5520_v62 = vld [vmem:[#allocation7_spill] sm:$0xff]  ;;  %v2245_v29 = vand.u32 4294901760, %v5039_v31 }
 0x298   : > { %v2070_v59 = vpop.f32.mrf.mxu1 }
 0x299   : > { %v2105_v24 = vmax.f32 %v2077_v58, 0.0  ;;  %v2071_v2 = vadd.f32 %v2070_v59, %v1894_v25  ;;  %v4985_v43 = vand.u32 4294901760, %v2102_v49  ;;  %v5006_v40 = vsub.f32 %v2103_v51, %v4971_v55  ;;  %v5518_v25 = vld [vmem:[#allocation12_spill] sm:$0xff] }
 0x29a   : > { %v3477_v50 = vpop.f32.mrf.mxu1  ;;  %v5033_v60 = vadd.f32 %v5518_v25, %v1840_v18  ;;  %v5036_v58 = vand.u32 4294901760, %v2099_v35  ;;  %v5525_v18 = vld [vmem:[#allocation11_spill] sm:$0xff]  ;;  %v2246_v25 = vsub.f32 %v5039_v31, %v2245_v29 }
 0x29b   : > { %v4961_v52 = vand.u32 4294901760, %v2105_v24  ;;  %v2104_v22 = vmax.f32 %v2071_v2, 0.0  ;;  %v2089_v34 = vadd.f32 %v3477_v50, %v1912_v47  ;;  %v5024_v28 = vsub.f32 %v2102_v49, %v4985_v43  ;;  %v5519_v47 = vld [vmem:[#allocation6_spill] sm:$0xff]  ;;  %v5521_v2 = vld [vmem:[#allocation13_spill] sm:$0xff] }
 0x29c   : > { %v2082_v4 = vpop.f32.mrf.mxu1  ;;  %v2231_v63 = vand.u32 4294901760, %v5006_v40  ;;  %v5053_v56 = vadd.f32 %v5521_v2, %v1834_v17  ;;  %v5081_v13 = vsub.f32 %v2099_v35, %v5036_v58  ;;  %v5089_v7 = vadd.f32 %v5525_v18, %v1822_v5 }
 0x29d   : > { %v4965_v48 = vand.u32 4294901760, %v2104_v22  ;;  %v2107_v15 = vmax.f32 %v2089_v34, 0.0  ;;  %v2083_v16 = vadd.f32 %v2082_v4, %v1906_v37  ;;  %v4974_v1 = vsub.f32 %v2105_v24, %v4961_v52  ;;  %v2108_v34 = vld [vmem:[%s5407_s5] sm:$0x7]  ;;  %v5524_v4 = vld [vmem:[#allocation10_spill] sm:$0xff] }
 0x29e   : > { %v1828_v24 = vadd.f32 %v5520_v62, %v5519_v47  ;;  %v5060_v37 = vsub.f32 %v2100_v39, %v5020_v14  ;;  %v2238_v50 = vand.u32 4294901760, %v5024_v28  ;;  %v2232_v0 = vsub.f32 %v5006_v40, %v2231_v63 }
 0x29f   : > { %v4976_v23 = vand.u32 4294901760, %v2107_v15  ;;  %v2106_v11 = vmax.f32 %v2083_v16, 0.0  ;;  %v4988_v57 = vsub.f32 %v2104_v22, %v4965_v48  ;;  %v2217_v36 = vand.u32 4294901760, %v4974_v1 }
 0x2a0   : > { %v5073_v49 = vadd.f32 %v5524_v4, %v1828_v24  ;;  %v5076_v16 = vand.u32 4294901760, %v2097_v44  ;;  %v2094_v27 = vmax.f32 %v5053_v56, 0.0  ;;  %v5092_v39 = vand.u32 4294901760, %v2096_v12 }
 0x2a1   : > { %v4991_v6 = vsub.f32 %v2107_v15, %v4976_v23  ;;  %v4993_v30 = vand.u32 4294901760, %v2106_v11  ;;  %3479 = vmatpush3.msra.mxu0 %v4976_v23  ;;  %v2224_v19 = vand.u32 4294901760, %v4988_v57  ;;  %v2218_v32 = vsub.f32 %v4974_v1, %v2217_v36 }
 0x2a2   : > { %3480 = vmatprep.subr.mxu0 %v5515_v61  ;;  %v2095_v15 = vmax.f32 %v5033_v60, 0.0  ;;  %v5096_v20 = vand.u32 4294901760, %v2108_v34  ;;  %v2252_v35 = vand.u32 4294901760, %v5060_v37  ;;  %v2239_v54 = vsub.f32 %v5024_v28, %v2238_v50 }
 0x2a3   : > { %v2203_v41 = vand.u32 4294901760, %v4991_v6  ;;  %v5011_v3 = vsub.f32 %v2106_v11, %v4993_v30  ;;  %3481 = vmatpush3.msra.mxu0 %v4993_v30  ;;  %v2225_v51 = vsub.f32 %v4988_v57, %v2224_v19  ;;  %v2219_v11 = vand.u32 4294901760, %v2218_v32 }
 0x2a4   : > { %3482 = vmatprep.subr.mxu0 %v5515_v61  ;;  %v2093_v53 = vmax.f32 %v5073_v49, 0.0  ;;  %v5107_v21 = vand.u32 4294901760, %v2095_v15  ;;  %v5112_v46 = vsub.f32 %v2097_v44, %v5076_v16  ;;  %v2233_v60 = vand.u32 4294901760, %v2232_v0 }
 0x2a5   : > { %v2204_v38 = vsub.f32 %v4991_v6, %v2203_v41  ;;  %v2210_v9 = vand.u32 4294901760, %v5011_v3  ;;  %3483 = vmatpush3.msra.mxu0 %v4961_v52  ;;  %v2226_v17 = vand.u32 4294901760, %v2225_v51  ;;  %v2092_v32 = vmax.f32 %v5089_v7, 0.0 }
 0x2a6   : > { %3484 = vmatprep.subr.mxu0 %v5515_v61  ;;  %v5125_v44 = vsub.f32 %v2108_v34, %v5096_v20  ;;  %v2266_v47 = vand.u32 4294901760, %v5099_v42  ;;  %v2253_v62 = vsub.f32 %v5060_v37, %v2252_v35  ;;  %v2240_v24 = vand.u32 4294901760, %v2239_v54 }
 0x2a7   : > { %v2211_v26 = vsub.f32 %v5011_v3, %v2210_v9  ;;  %3485 = vmatpush3.msra.mxu0 %v4965_v48  ;;  %v2205_v59 = vand.u32 4294901760, %v2204_v38  ;;  %v2259_v38 = vand.u32 4294901760, %v5081_v13  ;;  %v5135_v2 = vand.u32 4294901760, %v2093_v53 }
 0x2a8   : > { %3486 = vmatprep.subr.mxu0 %v5515_v61  ;;  %v5140_v56 = vsub.f32 %v2095_v15, %v5107_v21  ;;  %v5147_v34 = vand.u32 4294901760, %v2092_v32  ;;  %v2192_v8 = vand.u32 4294901760, %v5125_v44  ;;  %v2267_v4 = vsub.f32 %v5099_v42, %v2266_v47 }
 0x2a9   : > { %3487 = vmatpush3.msra.mxu0 %v4971_v55  ;;  %3514 = vmatpush3.msra.mxu1 %v2205_v59  ;;  %v2212_v22 = vand.u32 4294901760, %v2211_v26  ;;  %v5120_v26 = vand.u32 4294901760, %v2094_v27  ;;  %v5128_v59 = vsub.f32 %v2096_v12, %v5092_v39  ;;  %v2273_v12 = vand.u32 4294901760, %v5112_v46 }
 0x2aa   : > { %3488 = vmatprep.subr.mxu0 %v5515_v61  ;;  %3515 = vmatprep.subr.mxu1 %v5515_v61  ;;  %v2260_v51 = vsub.f32 %v5081_v13, %v2259_v38  ;;  %v2254_v49 = vand.u32 4294901760, %v2253_v62  ;;  %v5163_v15 = vsub.f32 %v2093_v53, %v5135_v2  ;;  %v2287_v0 = vand.u32 4294901760, %v5140_v56 }
 0x2ab   : > { %3489 = vmatpush3.msra.mxu0 %v4985_v43  ;;  %3516 = vmatpush3.msra.mxu1 %v2212_v22  ;;  %v2247_v22 = vand.u32 4294901760, %v2246_v25  ;;  %v5153_v10 = vsub.f32 %v2094_v27, %v5120_v26  ;;  %v2280_v5 = vand.u32 4294901760, %v5128_v59  ;;  %v2193_v7 = vsub.f32 %v5125_v44, %v2192_v8 }
 0x2ac   : > { %3490 = vmatprep.subr.mxu0 %v5515_v61  ;;  %3517 = vmatprep.subr.mxu1 %v5515_v61  ;;  %v2261_v18 = vand.u32 4294901760, %v2260_v51  ;;  %v5176_v27 = vsub.f32 %v2092_v32, %v5147_v34  ;;  %v2268_v53 = vand.u32 4294901760, %v2267_v4  ;;  %v2301_v25 = vand.u32 4294901760, %v5163_v15 }
 0x2ad   : > { %3491 = vmatpush3.msra.mxu0 %v5002_v33  ;;  %3518 = vmatpush3.msra.mxu1 %v2219_v11  ;;  %v2274_v11 = vsub.f32 %v5112_v46, %v2273_v12  ;;  %v2294_v54 = vand.u32 4294901760, %v5153_v10 }
 0x2ae   : > { %3492 = vmatprep.subr.mxu0 %v5515_v61  ;;  %3519 = vmatprep.subr.mxu1 %v5515_v61  ;;  %v2308_v62 = vand.u32 4294901760, %v5176_v27  ;;  %v2302_v4 = vsub.f32 %v5163_v15, %v2301_v25 }
 0x2af   : > { %3493 = vmatpush3.msra.mxu0 %v5020_v14  ;;  %3520 = vmatpush3.msra.mxu1 %v2226_v17  ;;  %v2281_v17 = vsub.f32 %v5128_v59, %v2280_v5  ;;  %v2275_v32 = vand.u32 4294901760, %v2274_v11 }
 0x2b0   : > { %3494 = vmatprep.subr.mxu0 %v5515_v61  ;;  %3521 = vmatprep.subr.mxu1 %v5515_v61  ;;  %v2309_v11 = vsub.f32 %v5176_v27, %v2308_v62 }
 0x2b1   : > { %3495 = vmatpush3.msra.mxu0 %v5036_v58  ;;  %3522 = vmatpush3.msra.mxu1 %v2233_v60  ;;  %v2288_v60 = vsub.f32 %v5140_v56, %v2287_v0  ;;  %v2282_v51 = vand.u32 4294901760, %v2281_v17 }
 0x2b2   : > { %3496 = vmatprep.subr.mxu0 %v5515_v61  ;;  %3523 = vmatprep.subr.mxu1 %v5515_v61  ;;  %v2310_v17 = vand.u32 4294901760, %v2309_v11 }
 0x2b3   : > { %3497 = vmatpush3.msra.mxu0 %v5056_v45  ;;  %3524 = vmatpush3.msra.mxu1 %v2240_v24  ;;  %v2295_v24 = vsub.f32 %v5153_v10, %v2294_v54 }
 0x2b4   : > { %3498 = vmatprep.subr.mxu0 %v5515_v61  ;;  %3525 = vmatprep.subr.mxu1 %v5515_v61 }
 0x2b5   : > { %3499 = vmatpush3.msra.mxu0 %v5076_v16  ;;  %3526 = vmatpush3.msra.mxu1 %v2247_v22  ;;  %v2194_v22 = vand.u32 4294901760, %v2193_v7  ;;  %v2303_v7 = vand.u32 4294901760, %v2302_v4 }
 0x2b6   : > { %3500 = vmatprep.subr.mxu0 %v5515_v61  ;;  %3527 = vmatprep.subr.mxu1 %v5515_v61 }
 0x2b7   : > { %3501 = vmatpush3.msra.mxu0 %v5092_v39  ;;  %3528 = vmatpush3.msra.mxu1 %v2254_v49  ;;  %v2289_v49 = vand.u32 4294901760, %v2288_v60 }
 0x2b8   : > { %3502 = vmatprep.subr.mxu0 %v5515_v61  ;;  %3529 = vmatprep.subr.mxu1 %v5515_v61 }
 0x2b9   : > { %3503 = vmatpush3.msra.mxu0 %v5107_v21  ;;  %3530 = vmatpush3.msra.mxu1 %v2261_v18  ;;  %v2296_v18 = vand.u32 4294901760, %v2295_v24 }
 0x2ba   : > { %3504 = vmatprep.subr.mxu0 %v5515_v61  ;;  %3531 = vmatprep.subr.mxu1 %v5515_v61 }
 0x2bb   : > { %3505 = vmatpush3.msra.mxu0 %v5120_v26  ;;  %3532 = vmatpush3.msra.mxu1 %v2268_v53 }
 0x2bc   : > { %3506 = vmatprep.subr.mxu0 %v5515_v61  ;;  %3533 = vmatprep.subr.mxu1 %v5515_v61 }
 0x2bd   : > { %3507 = vmatpush3.msra.mxu0 %v5135_v2  ;;  %3534 = vmatpush3.msra.mxu1 %v2275_v32 }
 0x2be   : > { %3508 = vmatprep.subr.mxu0 %v5515_v61  ;;  %3535 = vmatprep.subr.mxu1 %v5515_v61 }
 0x2bf   : > { %3509 = vmatpush3.msra.mxu0 %v5147_v34  ;;  %3536 = vmatpush3.msra.mxu1 %v2282_v51 }
 0x2c0   : > { %3537 = vmatprep.subr.mxu1 %v5515_v61  ;;  %3548 = vmatprep.subr.mxu0 %v5515_v61 }
 0x2c1   : > { %3511 = vmatmul.mubr.f32.vlgmr.msra.gmra.mxu0 %v2194_v22  ;;  %3538 = vmatpush3.msra.mxu1 %v2289_v49 }
 0x2c2   : > { %3549 = vmatpush3.msra.mxu0 %v4991_v6  ;;  %3539 = vmatprep.subr.mxu1 %v5515_v61 }
 0x2c3   : > { %3550 = vmatprep.subr.mxu0 %v5515_v61  ;;  %3540 = vmatpush3.msra.mxu1 %v2296_v18 }
 0x2c4   : > { %3551 = vmatpush3.msra.mxu0 %v5011_v3  ;;  %3541 = vmatprep.subr.mxu1 %v5515_v61 }
 0x2c5   : > { %3552 = vmatprep.subr.mxu0 %v5515_v61  ;;  %3542 = vmatpush3.msra.mxu1 %v2303_v7 }
 0x2c6   : > { %3553 = vmatpush3.msra.mxu0 %v4974_v1  ;;  %3543 = vmatprep.subr.mxu1 %v5515_v61 }
 0x2c7   : > { %3554 = vmatprep.subr.mxu0 %v5515_v61  ;;  %3544 = vmatpush3.msra.mxu1 %v2310_v17 }
 0x2c8   : > { %3555 = vmatpush3.msra.mxu0 %v4988_v57  ;;  %3546 = vmatmul.mubr.f32.vlgmr.msra.gmra.mxu1 %v5096_v20 }
 0x2c9   : > { %3556 = vmatprep.subr.mxu0 %v5515_v61  ;;  %3583 = vmatprep.subr.mxu1 %v5515_v61 }
 0x2ca   : > { %3557 = vmatpush3.msra.mxu0 %v5006_v40  ;;  %3584 = vmatpush3.msra.mxu1 %v4976_v23 }
 0x2cb   : > { %3558 = vmatprep.subr.mxu0 %v5515_v61  ;;  %3585 = vmatprep.subr.mxu1 %v5515_v61 }
 0x2cc   : > { %3559 = vmatpush3.msra.mxu0 %v5024_v28  ;;  %3586 = vmatpush3.msra.mxu1 %v4993_v30 }
 0x2cd   : > { %3560 = vmatprep.subr.mxu0 %v5515_v61  ;;  %3587 = vmatprep.subr.mxu1 %v5515_v61 }
 0x2ce   : > { %3561 = vmatpush3.msra.mxu0 %v5039_v31  ;;  %3588 = vmatpush3.msra.mxu1 %v4961_v52 }
 0x2cf   : > { %3562 = vmatprep.subr.mxu0 %v5515_v61  ;;  %3589 = vmatprep.subr.mxu1 %v5515_v61 }
 0x2d0   : > { %3563 = vmatpush3.msra.mxu0 %v5060_v37  ;;  %3590 = vmatpush3.msra.mxu1 %v4965_v48 }
 0x2d1   : > { %3564 = vmatprep.subr.mxu0 %v5515_v61  ;;  %3591 = vmatprep.subr.mxu1 %v5515_v61 }
 0x2d2   : > { %3565 = vmatpush3.msra.mxu0 %v5081_v13  ;;  %3592 = vmatpush3.msra.mxu1 %v4971_v55 }
 0x2d3   : > { %3566 = vmatprep.subr.mxu0 %v5515_v61  ;;  %3593 = vmatprep.subr.mxu1 %v5515_v61 }
 0x2d4   : > { %3567 = vmatpush3.msra.mxu0 %v5099_v42  ;;  %3594 = vmatpush3.msra.mxu1 %v4985_v43 }
 0x2d5   : > { %3568 = vmatprep.subr.mxu0 %v5515_v61  ;;  %3595 = vmatprep.subr.mxu1 %v5515_v61 }
 0x2d6   : > { %3569 = vmatpush3.msra.mxu0 %v5112_v46  ;;  %3596 = vmatpush3.msra.mxu1 %v5002_v33 }
 0x2d7   : > { %3570 = vmatprep.subr.mxu0 %v5515_v61  ;;  %3597 = vmatprep.subr.mxu1 %v5515_v61 }
 0x2d8   : > { %3571 = vmatpush3.msra.mxu0 %v5128_v59  ;;  %3598 = vmatpush3.msra.mxu1 %v5020_v14 }
 0x2d9   : > { %3572 = vmatprep.subr.mxu0 %v5515_v61  ;;  %3599 = vmatprep.subr.mxu1 %v5515_v61 }
 0x2da   : > { %3573 = vmatpush3.msra.mxu0 %v5140_v56  ;;  %3600 = vmatpush3.msra.mxu1 %v5036_v58 }
 0x2db   : > { %3574 = vmatprep.subr.mxu0 %v5515_v61  ;;  %3601 = vmatprep.subr.mxu1 %v5515_v61 }
 0x2dc   : > { %3575 = vmatpush3.msra.mxu0 %v5153_v10  ;;  %3602 = vmatpush3.msra.mxu1 %v5056_v45 }
 0x2dd   : > { %3576 = vmatprep.subr.mxu0 %v5515_v61  ;;  %3603 = vmatprep.subr.mxu1 %v5515_v61 }
 0x2de   : > { %3577 = vmatpush3.msra.mxu0 %v5163_v15  ;;  %3604 = vmatpush3.msra.mxu1 %v5076_v16 }
 0x2df   : > { %3578 = vmatprep.subr.mxu0 %v5515_v61  ;;  %3605 = vmatprep.subr.mxu1 %v5515_v61 }
 0x2e0   : > { %3579 = vmatpush3.msra.mxu0 %v5176_v27  ;;  %3580 = vmatprep.mubr.msk.f32.mxu0 %vm3844_vm0, %v5515_v61 }
 0x2e1   : > { %3606 = vmatpush3.msra.mxu1 %v5092_v39  ;;  %3581 = vmatmul.mubr.f32.vlgmr.msra.gmra.mxu0 %v5125_v44 }
 0x2e2   : > { %3607 = vmatprep.subr.mxu1 %v5515_v61  ;;  %3618 = vmatprep.subr.mxu0 %v5515_v61 }
 0x2e3   : > { %3608 = vmatpush3.msra.mxu1 %v5107_v21  ;;  %3619 = vmatpush3.msra.mxu0 %v2203_v41 }
 0x2e4   : > { %3609 = vmatprep.subr.mxu1 %v5515_v61  ;;  %3620 = vmatprep.subr.mxu0 %v5515_v61 }
 0x2e5   : > { %3610 = vmatpush3.msra.mxu1 %v5120_v26  ;;  %3621 = vmatpush3.msra.mxu0 %v2210_v9 }
 0x2e6   : > { %3611 = vmatprep.subr.mxu1 %v5515_v61  ;;  %3622 = vmatprep.subr.mxu0 %v5515_v61 }
 0x2e7   : > { %3612 = vmatpush3.msra.mxu1 %v5135_v2  ;;  %3623 = vmatpush3.msra.mxu0 %v2217_v36 }
 0x2e8   : > { %3613 = vmatprep.subr.mxu1 %v5515_v61  ;;  %3624 = vmatprep.subr.mxu0 %v5515_v61 }
 0x2e9   : > { %3614 = vmatpush3.msra.mxu1 %v5147_v34  ;;  %3615 = vmatprep.mubr.msk.f32.mxu1 %vm3844_vm0, %v5515_v61 }
 0x2ea   : > { %3625 = vmatpush3.msra.mxu0 %v2224_v19  ;;  %3616 = vmatmul.mubr.f32.vlgmr.msra.gmra.mxu1 %v2192_v8 }
 0x2eb   : > { %3626 = vmatprep.subr.mxu0 %v5515_v61  ;;  %3653 = vmatprep.subr.mxu1 %v5515_v61 }
 0x2ec   : > { %3627 = vmatpush3.msra.mxu0 %v2231_v63  ;;  %3654 = vmatpush3.msra.mxu1 %v4976_v23 }
 0x2ed   : > { %3628 = vmatprep.subr.mxu0 %v5515_v61  ;;  %3655 = vmatprep.subr.mxu1 %v5515_v61 }
 0x2ee   : > { %3629 = vmatpush3.msra.mxu0 %v2238_v50  ;;  %3656 = vmatpush3.msra.mxu1 %v4993_v30 }
 0x2ef   : > { %3630 = vmatprep.subr.mxu0 %v5515_v61  ;;  %3657 = vmatprep.subr.mxu1 %v5515_v61 }
 0x2f0   : > { %3631 = vmatpush3.msra.mxu0 %v2245_v29  ;;  %3658 = vmatpush3.msra.mxu1 %v4961_v52 }
 0x2f1   : > { %3632 = vmatprep.subr.mxu0 %v5515_v61  ;;  %3659 = vmatprep.subr.mxu1 %v5515_v61 }
 0x2f2   : > { %3633 = vmatpush3.msra.mxu0 %v2252_v35  ;;  %3660 = vmatpush3.msra.mxu1 %v4965_v48 }
 0x2f3   : > { %3634 = vmatprep.subr.mxu0 %v5515_v61  ;;  %3661 = vmatprep.subr.mxu1 %v5515_v61 }
 0x2f4   : > { %3635 = vmatpush3.msra.mxu0 %v2259_v38  ;;  %3662 = vmatpush3.msra.mxu1 %v4971_v55 }
 0x2f5   : > { %3636 = vmatprep.subr.mxu0 %v5515_v61  ;;  %3663 = vmatprep.subr.mxu1 %v5515_v61 }
 0x2f6   : > { %3637 = vmatpush3.msra.mxu0 %v2266_v47  ;;  %3664 = vmatpush3.msra.mxu1 %v4985_v43 }
 0x2f7   : > { %3638 = vmatprep.subr.mxu0 %v5515_v61  ;;  %3665 = vmatprep.subr.mxu1 %v5515_v61 }
 0x2f8   : > { %3639 = vmatpush3.msra.mxu0 %v2273_v12  ;;  %3666 = vmatpush3.msra.mxu1 %v5002_v33 }
 0x2f9   : > { %3640 = vmatprep.subr.mxu0 %v5515_v61  ;;  %3667 = vmatprep.subr.mxu1 %v5515_v61 }
 0x2fa   : > { %3641 = vmatpush3.msra.mxu0 %v2280_v5  ;;  %3668 = vmatpush3.msra.mxu1 %v5020_v14 }
 0x2fb   : > { %3642 = vmatprep.subr.mxu0 %v5515_v61  ;;  %3669 = vmatprep.subr.mxu1 %v5515_v61 }
 0x2fc   : > { %3643 = vmatpush3.msra.mxu0 %v2287_v0  ;;  %3670 = vmatpush3.msra.mxu1 %v5036_v58 }
 0x2fd   : > { %3644 = vmatprep.subr.mxu0 %v5515_v61  ;;  %3671 = vmatprep.subr.mxu1 %v5515_v61 }
 0x2fe   : > { %3645 = vmatpush3.msra.mxu0 %v2294_v54  ;;  %3672 = vmatpush3.msra.mxu1 %v5056_v45 }
 0x2ff   : > { %3646 = vmatprep.subr.mxu0 %v5515_v61  ;;  %3673 = vmatprep.subr.mxu1 %v5515_v61 }
 0x300   : > { %3647 = vmatpush3.msra.mxu0 %v2301_v25  ;;  %3674 = vmatpush3.msra.mxu1 %v5076_v16 }
 0x301   : > { %3648 = vmatprep.subr.mxu0 %v5515_v61  ;;  %3675 = vmatprep.subr.mxu1 %v5515_v61 }
 0x302   : > { %3649 = vmatpush3.msra.mxu0 %v2308_v62  ;;  %3650 = vmatprep.mubr.msk.f32.mxu0 %vm3844_vm0, %v5515_v61 }
 0x303   : > { %3676 = vmatpush3.msra.mxu1 %v5092_v39  ;;  %3651 = vmatmul.mubr.f32.vlgmr.msra.gmra.mxu0 %v5096_v20 }
 0x304   : > { %3677 = vmatprep.subr.mxu1 %v5515_v61  ;;  %3685 = vmatprep.mubr.msk.f32.mxu1 %vm3844_vm0, %v5515_v61 }
 0x305   : > { %3678 = vmatpush3.msra.mxu1 %v5107_v21 }
 0x306   : > { %3679 = vmatprep.subr.mxu1 %v5515_v61 }
 0x307   : > { %3680 = vmatpush3.msra.mxu1 %v5120_v26 }
 0x308   : > { %3681 = vmatprep.subr.mxu1 %v5515_v61 }
 0x309   : > { %3682 = vmatpush3.msra.mxu1 %v5135_v2 }
 0x30a   : > { %3683 = vmatprep.subr.mxu1 %v5515_v61 }
 0x30b   : > { %3684 = vmatpush3.msra.mxu1 %v5147_v34 }
 0x30c   : > { %3686 = vmatmul.mubr.f32.vlgmr.msra.gmra.mxu1 %v5096_v20 }
 0x381   : > { %v2196_v52 = vpop.f32.mrf.mxu0 }
 0x383   : > { %v3512_v48 = vpop.f32.mrf.mxu0 }
 0x388   : > { %v2347_v55 = vpop.f32.mrf.mxu1 }
 0x389   : > { %v2348_v33 = vadd.f32 %v2347_v55, %v2196_v52 }
 0x38a   : > { %v3547_v1 = vpop.f32.mrf.mxu1 }
 0x3a1   : > { %v2451_v23 = vpop.f32.mrf.mxu0 }
 0x3a2   : > { %v2452_v36 = vadd.f32 %v2451_v23, %v2348_v33 }
 0x3a3   : > { %v3582_v43 = vpop.f32.mrf.mxu0 }
 0x3aa   : > { %v2540_v57 = vpop.f32.mrf.mxu1 }
 0x3ab   : > { %v2541_v41 = vadd.f32 %v2540_v57, %v2452_v36 }
 0x3ac   : > { %v3617_v6 = vpop.f32.mrf.mxu1 }
 0x3c3   : > { %v2659_v30 = vpop.f32.mrf.mxu0 }
 0x3c4   : > { %v2660_v3 = vadd.f32 %v2659_v30, %v2541_v41 }
 0x3c5   : > { %v3652_v40 = vpop.f32.mrf.mxu0 }
 0x3cc   : > { %v2746_v61 = vpop.f32.mrf.mxu1 }
 0x3cd   : > { %v2747_v14 = vadd.f32 %v2746_v61, %v2660_v3 }
 0x3ce   : > { %v3687_v28 = vpop.f32.mrf.mxu1 }
 0x3cf   : > { %v2750_v19 = vmul.f32 %v2747_v14, %v2747_v14 }
 0x3d1   : > { %v2752_v9 = vsel %vm2751_vm1, %v2750_v19, 0.0 }
 0x3d2   : > { %v2753_v58 = vrot.slane %v2752_v9, 4 }
 0x3d4   : > { %v2754_v31 = vadd.f32 %v2753_v58, %v2752_v9 }
 0x3d6   : > { %v2755_v63 = vrot.slane %v2754_v31, 2 }
 0x3d8   : > { %v2756_v45 = vadd.f32 %v2755_v63, %v2754_v31 }
 0x3da   : > { %v2757_v37 = vrot.slane %v2756_v45, 1 }
 0x3dc   : > { %v2758_v50 = vadd.f32 %v2757_v37, %v2756_v45 }
 0x3de   : > { %3776 = vrsqrt.f32 %v2758_v50 }
 0x3eb   : > { %v3777_v16 = vpop.eup %3776 }
 0x3ec   : > { %v2760_v13 = vmul.f32 %v3777_v16, %v2747_v14 }
 0x3ee   : > { %2761 = vst [vmem:[%s242_s12] sm:$0x7] %v2760_v13 }
 0x3ef   : > { %3791 = shalt.err (!%p3788_p3)
}
 0x3f0   : > { %s3792_s26 = scalar_lea.hbm %s2774_s16, 64  ;;  %s3796_s9 = scalar_lea.hbm %s5408_s6, 128 }
 0x3f1   : > { %p3793_p4 = scmp.ne.s32.totalorder %s2774_s16, %s3792_s26  ;;  %p3797_p9 = scmp.lt.s32.totalorder %s2774_s16, %s5408_s6 }
 0x3f2   : > { %p3798_p10 = scmp.lt.s32.totalorder %s3796_s9, %s3792_s26 }
 0x3f3   : > { %p3794_p7 = pnand %p3793_p4, %p3919_p5 }
 0x3f4   : > { %p3799_p11 = por %p3798_p10, %p3797_p9 }
 0x3f5   : > { %p3795_p8 = pneg %p3794_p7 }
 0x3f7   : > { %p3800_p12 = pnand %p3799_p11, %p3795_p8 }
 0x3f9   : > { %3803 = shalt.err (!%p3800_p12)
}
 0x3fa   : > { %3688 = dma.vmem_to_hbm [thread:$0]  (%p3919_p5), %s2777_s13, 64, %s2774_s16, %s2763_s17  }
 0x3fb PF: > { %p3694_p13 = scmp.ge.s32.totalorder %s3838_s24, 2  ;;  %s2788_s12 = sand.u32 1, %s3826_s21  }
 0x3fc   : > { %s2789_s14 = scalar_lea.sflag [#allocation3], %s2788_s12 }
 0x3fd   : > { %p3691_p0 = pnand %p3694_p13, %p3923_p6 }
 0x3ff   : > { %p3692_p1 = pneg %p3691_p0 }
 0x401   : > { %3821 = dma.done.wait (%p3692_p1), %s2789_s14, 64  }
 0x402   : > { %3823 = vsyncadd (%p3692_p1), %s2789_s14, 4294967232  ;;  %p16_p2 = scmp.ge.s32.totalorder %s3906_s27, 4   ;;  %s5526_s21 = smov %s3830_s22 }
 0x403   : > { %s5527_s22 = smov %s3834_s23  ;;  %s5528_s23 = smov %s3917_s30 }
 0x404   : > { %s5529_s24 = smov %s3906_s27  ;;  %18 = sbr.rel (!%p16_p2) target bundleno = 3 (0x3), region = 79 }
 0x409   :  { %2794 = vsyncpa [#allocation3], 1 }
 0x40a   :  { %2796 = vsyncpa [#allocation3 + $0x1], 1 }

</bundles_post_ra>
